<compile_context>
chip_gen: v6e
topology: v6e:2x2x1
jax: 0.10.0
libtpu: 0.0.40
codegen_flags: <defaults>
</compile_context>

<pallas_src>
import jax
import jax.numpy as jnp
from jax import lax
from jax.experimental import pallas as pl
from jax.experimental.pallas import tpu as pltpu


# -----------------------------------------------------------------------------
# helpers
# -----------------------------------------------------------------------------
def _round_up(x, m):
    return ((x + m - 1) // m) * m


def _choose_tile(N, L, per_row_bytes, budget=12 * 1024 * 1024):
    """Pick (N_pad, TN).  TN multiple of 8; multiple of 128 if more than one tile."""
    n8 = _round_up(N, 8)
    cap = max(128, (budget // max(1, L * per_row_bytes)) // 128 * 128)
    if n8 <= cap:
        return n8, n8                     # single tile covers everything
    tn = min(cap, 1024)
    return _round_up(n8, tn), tn


# -----------------------------------------------------------------------------
# Pallas kernel
# -----------------------------------------------------------------------------
def _make_kernel(L, TN, Hpw, Hpph, Hiph):
    s_pw, s_pph, s_iph = 3 * Hpw, 3 * Hpph, 3 * Hiph
    o_pph = s_pw
    o_iph = s_pw + s_pph
    Htot = Hpw + Hpph + Hiph

    def kernel(char_ref, sentctx_ref,
               w_char_ref, w_sc_ref, const_ref,
               w_pw_all_ref, w_pph_all_ref, w_iph_self_ref,
               bhn_all_ref, wl_all_ref, bl_all_ref,
               out_ref, gate_scr, h_scr):

        def dotf(a, b):
            return jnp.dot(a, b, preferred_element_type=jnp.float32)

        # ---- Pre-loop: one big lane-dense char projection (all steps, all
        # GRUs) stored once into the combined gate scratch.
        char2d = char_ref[0]                                # (L*TN, Dc)
        gate_scr[...] = dotf(char2d, w_char_ref[...])       # (L*TN, Gtot)

        # ---- Pre-loop: sent/ctx projection + gate-bias constants (per sample)
        const = dotf(sentctx_ref[...], w_sc_ref[...]) + const_ref[...]
        const_pw = const[:, :s_pw]
        const_pph = const[:, o_pph:o_iph]
        const_iph = const[:, o_iph:]

        # Pre-broadcast the r-gated b_hn biases once (no per-step broadcasts).
        bhn = jnp.broadcast_to(bhn_all_ref[...], (TN, Htot))
        bhn_pw = bhn[:, :Hpw]
        bhn_pph = bhn[:, Hpw:Hpw + Hpph]
        bhn_iph = bhn[:, Hpw + Hpph:]

        # Loop-invariant recurrent weights.
        w_pw_all = w_pw_all_ref[...]        # (Hpw,  s_pw + s_pph + s_iph)
        w_pph_all = w_pph_all_ref[...]      # (Hpph, s_pph + s_iph)
        w_iph_self = w_iph_self_ref[...]    # (Hiph, s_iph)

        def gru_gates(g, bhn_n, H):
            # PyTorch GRU with h_prev == 0; bias sums already folded into g.
            r = jax.nn.sigmoid(g[:, :H])
            z = jax.nn.sigmoid(g[:, H:2 * H])
            n = jnp.tanh(g[:, 2 * H:] + r * bhn_n)
            return (1.0 - z) * n

        def row_ds(i):
            start = i * TN
            if not isinstance(start, int):
                start = pl.multiple_of(start, TN)
            return pl.ds(start, TN)

        def step(i, carry):
            c_pw, c_pph, c_iph = carry
            rows = row_ds(i)
            g_all = gate_scr[rows, :]                        # (TN, Gtot)

            # PW decoder
            g_pw = g_all[:, :s_pw] + const_pw + c_pw
            pw_new = gru_gates(g_pw, bhn_pw, Hpw)
            # Single fused matmul: pw_new -> (own next-step gates | PPH gates |
            # IPH gates)
            f_pw = dotf(pw_new, w_pw_all)                    # (TN, Gtot)

            # PPH decoder
            g_pph = (g_all[:, o_pph:o_iph] + const_pph
                     + f_pw[:, o_pph:o_iph] + c_pph)
            pph_new = gru_gates(g_pph, bhn_pph, Hpph)
            f_pph = dotf(pph_new, w_pph_all)                 # (TN, s_pph+s_iph)

            # IPH decoder
            g_iph = (g_all[:, o_iph:] + const_iph
                     + f_pw[:, o_iph:] + f_pph[:, s_pph:] + c_iph)
            iph_new = gru_gates(g_iph, bhn_iph, Hiph)
            f_iph = dotf(iph_new, w_iph_self)                # (TN, s_iph)

            # Accumulate hidden states (full-width single store) for the
            # post-loop fused head.
            h_scr[rows, :] = jnp.concatenate([pw_new, pph_new, iph_new],
                                             axis=1)
            return f_pw[:, :s_pw], f_pph[:, :s_pph], f_iph

        init = (jnp.zeros((TN, s_pw), jnp.float32),
                jnp.zeros((TN, s_pph), jnp.float32),
                jnp.zeros((TN, s_iph), jnp.float32))
        if L <= 32:
            # Fully unrolled: static slices, full LLO scheduling visibility.
            carry = init
            for i in range(L):
                carry = step(i, carry)
        else:
            lax.fori_loop(0, L, step, init, unroll=4)

        # ---- Post-loop fused head: block-diagonal (6, Htot) x (Htot, L*TN)
        # -> single lane-dense (6, L*TN) output store.
        out_ref[...] = lax.dot_general(
            wl_all_ref[...], h_scr[...],
            (((1,), (1,)), ((), ())),
            preferred_element_type=jnp.float32) + bl_all_ref[...]

    return kernel


# -----------------------------------------------------------------------------
# Weight packing (all slicing/fusion done host-side, tile-clean for the kernel)
# -----------------------------------------------------------------------------
def _pack_params(params, Dc, Ds, Dx):
    f32 = jnp.float32
    mlc = Dc + Ds + Dx
    w_ih_pw = jnp.asarray(params["pw"]["w_ih"], f32)
    w_ih_pph = jnp.asarray(params["pph"]["w_ih"], f32)
    w_ih_iph = jnp.asarray(params["iph"]["w_ih"], f32)
    Hpw = params["pw"]["w_hh"].shape[1]
    Hpph = params["pph"]["w_hh"].shape[1]
    Hiph = params["iph"]["w_hh"].shape[1]
    Htot = Hpw + Hpph + Hiph

    # char / sent+ctx projections, fused across the three decoders.
    w_char = jnp.concatenate(
        [w_ih_pw[:, :Dc].T, w_ih_pph[:, :Dc].T, w_ih_iph[:, :Dc].T], axis=1)
    w_sc = jnp.concatenate(
        [w_ih_pw[:, Dc:mlc].T, w_ih_pph[:, Dc:mlc].T, w_ih_iph[:, Dc:mlc].T],
        axis=1)

    # Each decoder's fresh hidden state -> downstream / next-step gates, fused.
    w_pw_all = jnp.concatenate(
        [w_ih_pw[:, mlc:mlc + Hpw].T,            # -> own gates (next step)
         w_ih_pph[:, mlc:mlc + Hpw].T,           # -> PPH gates (this step)
         w_ih_iph[:, mlc:mlc + Hpw].T], axis=1)  # -> IPH gates (this step)
    w_pph_all = jnp.concatenate(
        [w_ih_pph[:, mlc + Hpw:mlc + Hpw + Hpph].T,
         w_ih_iph[:, mlc + Hpw:mlc + Hpw + Hpph].T], axis=1)
    w_iph_self = w_ih_iph[:, mlc + Hpw + Hpph:mlc + Hpw + Hpph + Hiph].T

    # Gate constants: r,z gates get (b_ih + b_hh); n gate gets b_ih only
    # (b_hn is applied inside the kernel as r * b_hn).
    def gate_const(p, H):
        bi = jnp.asarray(p["b_ih"], f32)
        bh = jnp.asarray(p["b_hh"], f32)
        return jnp.concatenate([bi[:2 * H] + bh[:2 * H], bi[2 * H:]])

    const_all = jnp.concatenate(
        [gate_const(params["pw"], Hpw),
         gate_const(params["pph"], Hpph),
         gate_const(params["iph"], Hiph)]).reshape(1, -1)

    bhn_all = jnp.concatenate(
        [jnp.asarray(params["pw"]["b_hh"], f32)[2 * Hpw:],
         jnp.asarray(params["pph"]["b_hh"], f32)[2 * Hpph:],
         jnp.asarray(params["iph"]["b_hh"], f32)[2 * Hiph:]]).reshape(1, Htot)

    # Block-diagonal fused linear heads: rows 0-1 PW, 2-3 PPH, 4-5 IPH.
    wl_all = jnp.zeros((6, Htot), f32)
    wl_all = wl_all.at[0:2, 0:Hpw].set(jnp.asarray(params["pw_lin"]["w"], f32))
    wl_all = wl_all.at[2:4, Hpw:Hpw + Hpph].set(
        jnp.asarray(params["pph_lin"]["w"], f32))
    wl_all = wl_all.at[4:6, Hpw + Hpph:].set(
        jnp.asarray(params["iph_lin"]["w"], f32))
    bl_all = jnp.concatenate(
        [jnp.asarray(params["pw_lin"]["b"], f32),
         jnp.asarray(params["pph_lin"]["b"], f32),
         jnp.asarray(params["iph_lin"]["b"], f32)]).reshape(6, 1)

    return [w_char, w_sc, const_all, w_pw_all, w_pph_all, w_iph_self,
            bhn_all, wl_all, bl_all]


# -----------------------------------------------------------------------------
# Wrapper
# -----------------------------------------------------------------------------
@jax.jit
def multi_task_forward(params, char, sent, ctx):
    B, C, L, Dc = char.shape
    N = B * C
    Ds = sent.shape[-1]
    Dx = ctx.shape[-1]
    Dsc = Ds + Dx
    Hpw = params["pw"]["w_hh"].shape[1]
    Hpph = params["pph"]["w_hh"].shape[1]
    Hiph = params["iph"]["w_hh"].shape[1]
    Htot = Hpw + Hpph + Hiph
    Gtot = 3 * Htot
    f32 = jnp.float32

    # VMEM bytes per (step, sample) row, lane-padding aware:
    #   combined gate scratch + combined hidden scratch + double-buffered char
    #   tile + double-buffered 6-row (->8 sublanes) output columns.
    per_row_bytes = 4 * (_round_up(Gtot, 128) + _round_up(Htot, 128)
                         + 2 * _round_up(Dc, 128) + 16)
    N_pad, TN = _choose_tile(N, L, per_row_bytes)
    G = N_pad // TN

    charN = char.reshape(N, L, Dc).astype(f32)
    sentctxN = jnp.concatenate(
        [sent.reshape(N, Ds), ctx.reshape(N, Dx)], axis=1).astype(f32)
    if N_pad != N:
        charN = jnp.pad(charN, ((0, N_pad - N), (0, 0), (0, 0)))
        sentctxN = jnp.pad(sentctxN, ((0, N_pad - N), (0, 0)))

    # (G, L*TN, Dc): within a tile, rows are ordered (step l, sample t).
    char_k = (charN.reshape(G, TN, L, Dc)
              .transpose(0, 2, 1, 3)
              .reshape(G, L * TN, Dc))

    packed = _pack_params(params, Dc, Ds, Dx)
    kernel = _make_kernel(L, TN, Hpw, Hpph, Hiph)

    def full_spec(x):
        zeros = (0,) * x.ndim
        return pl.BlockSpec(x.shape, lambda j, _z=zeros: _z)

    in_specs = ([pl.BlockSpec((1, L * TN, Dc), lambda j: (j, 0, 0)),
                 pl.BlockSpec((TN, Dsc), lambda j: (j, 0))]
                + [full_spec(x) for x in packed])

    out_shape = jax.ShapeDtypeStruct((6, L * N_pad), f32)
    out_spec = pl.BlockSpec((6, L * TN), lambda j: (0, j))

    scratch_shapes = [
        pltpu.VMEM((L * TN, Gtot), f32),   # fused gate projections
        pltpu.VMEM((L * TN, Htot), f32),   # fused hidden states
    ]

    # Only raise the scoped-VMEM limit when the estimated footprint actually
    # needs it (keeps default compiler config for small problems).
    weight_bytes = sum(int(x.size) for x in packed) * 4
    est_bytes = (L * TN * per_row_bytes + 2 * weight_bytes
                 + 2 * TN * 4 * _round_up(Dsc, 128))
    cp_kwargs = {"dimension_semantics": ("parallel",)}
    if est_bytes > 14 * 1024 * 1024:
        cp_kwargs["vmem_limit_bytes"] = 64 * 1024 * 1024

    out6 = pl.pallas_call(
        kernel,
        grid=(G,),
        out_shape=out_shape,
        in_specs=in_specs,
        out_specs=out_spec,
        scratch_shapes=scratch_shapes,
        compiler_params=pltpu.CompilerParams(**cp_kwargs),
    )(char_k, sentctxN, *packed)

    # (6, L*N_pad) -> (6, N_pad, L) -> (6, B, C, L)
    o = (out6.reshape(6, G, L, TN)
         .transpose(0, 1, 3, 2)
         .reshape(6, N_pad, L)[:, :N, :]
         .reshape(6, B, C, L))
    pw = o[0:2].transpose(1, 0, 2, 3)       # (B, 2, C, L)
    pph = o[2:4].transpose(1, 0, 2, 3)
    iph = o[4:6].transpose(1, 0, 2, 3)
    return pw, pph, iph


# -----------------------------------------------------------------------------
# Pure-JAX reference (mirrors the PyTorch forward exactly)
# -----------------------------------------------------------------------------
_HI = jax.lax.Precision.HIGHEST


def _gru_cell_zero_hidden_ref(x, p):
    H = p["w_hh"].shape[1]
    gi = jnp.dot(x, p["w_ih"].T, precision=_HI) + p["b_ih"]
    bh = p["b_hh"]                           # W_hh @ 0 == 0
    r = jax.nn.sigmoid(gi[:, :H] + bh[:H])
    z = jax.nn.sigmoid(gi[:, H:2 * H] + bh[H:2 * H])
    n = jnp.tanh(gi[:, 2 * H:] + r * bh[2 * H:])
    return (1.0 - z) * n


def reference_forward(params, char, sent, ctx):
    B, C, L, Dc = char.shape
    N = B * C
    charN = char.reshape(N, L, Dc)
    sentN = sent.reshape(N, -1)
    ctxN = ctx.reshape(N, -1)
    Hpw = params["pw"]["w_hh"].shape[1]
    Hpph = params["pph"]["w_hh"].shape[1]
    Hiph = params["iph"]["w_hh"].shape[1]

    pw_h = jnp.zeros((N, Hpw), jnp.float32)
    pph_h = jnp.zeros((N, Hpph), jnp.float32)
    iph_h = jnp.zeros((N, Hiph), jnp.float32)
    PWs, PPHs, IPHs = [], [], []
    for i in range(L):
        x = jnp.concatenate([charN[:, i], sentN, ctxN, pw_h], axis=1)
        pw_h = _gru_cell_zero_hidden_ref(x, params["pw"])
        x = jnp.concatenate([charN[:, i], sentN, ctxN, pw_h, pph_h], axis=1)
        pph_h = _gru_cell_zero_hidden_ref(x, params["pph"])
        x = jnp.concatenate([charN[:, i], sentN, ctxN, pw_h, pph_h, iph_h],
                            axis=1)
        iph_h = _gru_cell_zero_hidden_ref(x, params["iph"])
        PWs.append(pw_h)
        PPHs.append(pph_h)
        IPHs.append(iph_h)

    PW = jnp.stack(PWs, axis=1).reshape(B, C, L, -1)
    PPH = jnp.stack(PPHs, axis=1).reshape(B, C, L, -1)
    IPH = jnp.stack(IPHs, axis=1).reshape(B, C, L, -1)

    def head(x, p):
        return jnp.dot(x, p["w"].T, precision=_HI) + p["b"]

    return (head(PW, params["pw_lin"]).transpose(0, 3, 1, 2),
            head(PPH, params["pph_lin"]).transpose(0, 3, 1, 2),
            head(IPH, params["iph_lin"]).transpose(0, 3, 1, 2))


# -----------------------------------------------------------------------------
# Deterministic parameter init (shapes match the nn.Module __init__)
# -----------------------------------------------------------------------------
def init_params(key, Dc, Ds, Dx, Hpw, Hpph, Hiph):
    mlc = Dc + Ds + Dx

    def uniform(k, shape, bound):
        return jax.random.uniform(k, shape, jnp.float32, -bound, bound)

    def gru_params(k, din, h):
        k1, k2, k3, k4 = jax.random.split(k, 4)
        b = 1.0 / float(jnp.sqrt(h))
        return {"w_ih": uniform(k1, (3 * h, din), b),
                "w_hh": uniform(k2, (3 * h, h), b),
                "b_ih": uniform(k3, (3 * h,), b),
                "b_hh": uniform(k4, (3 * h,), b)}

    def lin_params(k, h):
        k1, k2 = jax.random.split(k)
        b = 1.0 / float(jnp.sqrt(h))
        return {"w": uniform(k1, (2, h), b), "b": uniform(k2, (2,), b)}

    ks = jax.random.split(key, 6)
    return {
        "pw": gru_params(ks[0], mlc + Hpw, Hpw),
        "pph": gru_params(ks[1], mlc + Hpw + Hpph, Hpph),
        "iph": gru_params(ks[2], mlc + Hpw + Hpph + Hiph, Hiph),
        "pw_lin": lin_params(ks[3], Hpw),
        "pph_lin": lin_params(ks[4], Hpph),
        "iph_lin": lin_params(ks[5], Hiph),
    }


if __name__ == "__main__":
    B, C, L = 2, 4, 8
    Dc, Ds, Dx = 12, 8, 10
    Hpw = Hpph = Hiph = 16

    key = jax.random.PRNGKey(0)
    k1, k2, k3, k4 = jax.random.split(key, 4)
    char = jax.random.normal(k1, (B, C, L, Dc), jnp.float32)
    sent = jax.random.normal(k2, (B, C, Ds), jnp.float32)
    ctx = jax.random.normal(k3, (B, C, Dx), jnp.float32)
    params = init_params(k4, Dc, Ds, Dx, Hpw, Hpph, Hiph)

    pw, pph, iph = multi_task_forward(params, char, sent, ctx)
    jax.block_until_ready((pw, pph, iph))

    assert pw.shape == (B, 2, C, L)
    assert pph.shape == (B, 2, C, L)
    assert iph.shape == (B, 2, C, L)

    rpw, rpph, riph = reference_forward(params, char, sent, ctx)
    for got, want in ((pw, rpw), (pph, rpph), (iph, riph)):
        err = float(jnp.max(jnp.abs(got - want)))
        assert jnp.allclose(got, want, atol=1e-4, rtol=1e-4), err

    print("KERNEL_OK")
</pallas_src>

<mosaic_0001>
module attributes {stable_mosaic.version = 11 : i64} {
  func.func @kernel(%arg0: i32, %arg1: memref<1x64x12xf32, #tpu.memory_space<vmem>>, %arg2: memref<8x18xf32, #tpu.memory_space<vmem>>, %arg3: memref<12x144xf32, #tpu.memory_space<vmem>>, %arg4: memref<18x144xf32, #tpu.memory_space<vmem>>, %arg5: memref<1x144xf32, #tpu.memory_space<vmem>>, %arg6: memref<16x144xf32, #tpu.memory_space<vmem>>, %arg7: memref<16x96xf32, #tpu.memory_space<vmem>>, %arg8: memref<16x48xf32, #tpu.memory_space<vmem>>, %arg9: memref<1x48xf32, #tpu.memory_space<vmem>>, %arg10: memref<6x48xf32, #tpu.memory_space<vmem>>, %arg11: memref<6x1xf32, #tpu.memory_space<vmem>>, %arg12: memref<6x64xf32, #tpu.memory_space<vmem>>, %arg13: memref<64x144xf32, #tpu.memory_space<vmem>>, %arg14: memref<64x48xf32, #tpu.memory_space<vmem>>) attributes {dimension_semantics = [#tpu.dimension_semantics<parallel>], iteration_bounds = array<i64: 1>, scalar_prefetch = 0 : i64, scratch_operands = 2 : i64, tpu.core_type = #tpu.core_type<tc>, window_params = [{transform_indices = @transform_0, window_bounds = array<i64: 1, 64, 12>}, {transform_indices = @transform_1, window_bounds = array<i64: 8, 18>}, {pipeline_mode = #tpu.pipeline_mode<synchronous>, transform_indices = @transform_2, window_bounds = array<i64: 12, 144>}, {pipeline_mode = #tpu.pipeline_mode<synchronous>, transform_indices = @transform_3, window_bounds = array<i64: 18, 144>}, {pipeline_mode = #tpu.pipeline_mode<synchronous>, transform_indices = @transform_4, window_bounds = array<i64: 1, 144>}, {pipeline_mode = #tpu.pipeline_mode<synchronous>, transform_indices = @transform_5, window_bounds = array<i64: 16, 144>}, {pipeline_mode = #tpu.pipeline_mode<synchronous>, transform_indices = @transform_6, window_bounds = array<i64: 16, 96>}, {pipeline_mode = #tpu.pipeline_mode<synchronous>, transform_indices = @transform_7, window_bounds = array<i64: 16, 48>}, {pipeline_mode = #tpu.pipeline_mode<synchronous>, transform_indices = @transform_8, window_bounds = array<i64: 1, 48>}, {pipeline_mode = #tpu.pipeline_mode<synchronous>, transform_indices = @transform_9, window_bounds = array<i64: 6, 48>}, {pipeline_mode = #tpu.pipeline_mode<synchronous>, transform_indices = @transform_10, window_bounds = array<i64: 6, 1>}, {transform_indices = @transform_11, window_bounds = array<i64: 6, 64>}]} {
    %c0 = arith.constant 0 : index
    %c0_0 = arith.constant 0 : index
    %c0_1 = arith.constant 0 : index
    %0 = vector.load %arg1[%c0, %c0_0, %c0_1] : memref<1x64x12xf32, #tpu.memory_space<vmem>>, vector<1x64x12xf32>
    %1 = vector.shape_cast %0 : vector<1x64x12xf32> to vector<64x12xf32>
    %c0_2 = arith.constant 0 : index
    %c0_3 = arith.constant 0 : index
    %2 = vector.load %arg3[%c0_2, %c0_3] : memref<12x144xf32, #tpu.memory_space<vmem>>, vector<12x144xf32>
    %cst = arith.constant dense<0.000000e+00> : vector<64x144xf32>
    %3 = tpu.matmul %1, %2, %cst {dimension_numbers = #tpu.dot_dimension_numbers<[1], [0], [0], [1], [0, 0, 1, 1], [], []>} : vector<64x12xf32>, vector<12x144xf32>, vector<64x144xf32> -> vector<64x144xf32>
    %c0_4 = arith.constant 0 : index
    %c0_5 = arith.constant 0 : index
    %4 = vector.load %arg13[%c0_4, %c0_5] : memref<64x144xf32, #tpu.memory_space<vmem>>, vector<64x144xf32>
    tpu.vector_store %arg13[%c0_4, %c0_5], %3 {strides = array<i32>} : memref<64x144xf32, #tpu.memory_space<vmem>>, vector<64x144xf32>,
    %c0_6 = arith.constant 0 : index
    %c0_7 = arith.constant 0 : index
    %5 = vector.load %arg2[%c0_6, %c0_7] : memref<8x18xf32, #tpu.memory_space<vmem>>, vector<8x18xf32>
    %c0_8 = arith.constant 0 : index
    %c0_9 = arith.constant 0 : index
    %6 = vector.load %arg4[%c0_8, %c0_9] : memref<18x144xf32, #tpu.memory_space<vmem>>, vector<18x144xf32>
    %cst_10 = arith.constant dense<0.000000e+00> : vector<8x144xf32>
    %7 = tpu.matmul %5, %6, %cst_10 {dimension_numbers = #tpu.dot_dimension_numbers<[1], [0], [0], [1], [0, 0, 1, 1], [], []>} : vector<8x18xf32>, vector<18x144xf32>, vector<8x144xf32> -> vector<8x144xf32>
    %c0_11 = arith.constant 0 : index
    %c0_12 = arith.constant 0 : index
    %8 = vector.load %arg5[%c0_11, %c0_12] : memref<1x144xf32, #tpu.memory_space<vmem>>, vector<1x144xf32>
    %9 = vector.broadcast %8 : vector<1x144xf32> to vector<8x144xf32>
    %10 = arith.addf %7, %9 : vector<8x144xf32>
    %11 = vector.extract_strided_slice %10 {offsets = [0, 0], sizes = [8, 48], strides = [1, 1]} : vector<8x144xf32> to vector<8x48xf32>
    %12 = vector.extract_strided_slice %10 {offsets = [0, 48], sizes = [8, 48], strides = [1, 1]} : vector<8x144xf32> to vector<8x48xf32>
    %13 = vector.extract_strided_slice %10 {offsets = [0, 96], sizes = [8, 48], strides = [1, 1]} : vector<8x144xf32> to vector<8x48xf32>
    %c0_13 = arith.constant 0 : index
    %c0_14 = arith.constant 0 : index
    %14 = vector.load %arg9[%c0_13, %c0_14] : memref<1x48xf32, #tpu.memory_space<vmem>>, vector<1x48xf32>
    %15 = vector.shape_cast %14 : vector<1x48xf32> to vector<1x48xf32>
    %16 = vector.broadcast %15 : vector<1x48xf32> to vector<8x48xf32>
    %17 = vector.extract_strided_slice %16 {offsets = [0, 0], sizes = [8, 16], strides = [1, 1]} : vector<8x48xf32> to vector<8x16xf32>
    %18 = vector.extract_strided_slice %16 {offsets = [0, 16], sizes = [8, 16], strides = [1, 1]} : vector<8x48xf32> to vector<8x16xf32>
    %19 = vector.extract_strided_slice %16 {offsets = [0, 32], sizes = [8, 16], strides = [1, 1]} : vector<8x48xf32> to vector<8x16xf32>
    %c0_15 = arith.constant 0 : index
    %c0_16 = arith.constant 0 : index
    %20 = vector.load %arg6[%c0_15, %c0_16] : memref<16x144xf32, #tpu.memory_space<vmem>>, vector<16x144xf32>
    %c0_17 = arith.constant 0 : index
    %c0_18 = arith.constant 0 : index
    %21 = vector.load %arg7[%c0_17, %c0_18] : memref<16x96xf32, #tpu.memory_space<vmem>>, vector<16x96xf32>
    %c0_19 = arith.constant 0 : index
    %c0_20 = arith.constant 0 : index
    %22 = vector.load %arg8[%c0_19, %c0_20] : memref<16x48xf32, #tpu.memory_space<vmem>>, vector<16x48xf32>
    %cst_21 = arith.constant 0.000000e+00 : f32
    %23 = vector.broadcast %cst_21 : f32 to vector<8x48xf32>
    %cst_22 = arith.constant 0.000000e+00 : f32
    %24 = vector.broadcast %cst_22 : f32 to vector<8x48xf32>
    %cst_23 = arith.constant 0.000000e+00 : f32
    %25 = vector.broadcast %cst_23 : f32 to vector<8x48xf32>
    %c0_24 = arith.constant 0 : index
    %c0_25 = arith.constant 0 : index
    %26 = vector.load %arg13[%c0_24, %c0_25] : memref<64x144xf32, #tpu.memory_space<vmem>>, vector<8x144xf32>
    %27 = vector.extract_strided_slice %26 {offsets = [0, 0], sizes = [8, 48], strides = [1, 1]} : vector<8x144xf32> to vector<8x48xf32>
    %28 = arith.addf %27, %11 : vector<8x48xf32>
    %29 = arith.addf %28, %23 : vector<8x48xf32>
    %30 = vector.extract_strided_slice %29 {offsets = [0, 0], sizes = [8, 16], strides = [1, 1]} : vector<8x48xf32> to vector<8x16xf32>
    %31 = arith.negf %30 : vector<8x16xf32>
    %32 = math.exp %31 : vector<8x16xf32>
    %cst_26 = arith.constant 1.000000e+00 : f32
    %33 = vector.broadcast %cst_26 : f32 to vector<8x16xf32>
    %34 = arith.addf %33, %32 : vector<8x16xf32>
    %35 = arith.divf %33, %34 : vector<8x16xf32>
    %36 = vector.extract_strided_slice %29 {offsets = [0, 16], sizes = [8, 16], strides = [1, 1]} : vector<8x48xf32> to vector<8x16xf32>
    %37 = arith.negf %36 : vector<8x16xf32>
    %38 = math.exp %37 : vector<8x16xf32>
    %cst_27 = arith.constant 1.000000e+00 : f32
    %39 = vector.broadcast %cst_27 : f32 to vector<8x16xf32>
    %40 = arith.addf %39, %38 : vector<8x16xf32>
    %41 = arith.divf %39, %40 : vector<8x16xf32>
    %42 = vector.extract_strided_slice %29 {offsets = [0, 32], sizes = [8, 16], strides = [1, 1]} : vector<8x48xf32> to vector<8x16xf32>
    %43 = arith.mulf %35, %17 : vector<8x16xf32>
    %44 = arith.addf %42, %43 : vector<8x16xf32>
    %45 = math.tanh %44 : vector<8x16xf32>
    %cst_28 = arith.constant 1.000000e+00 : f32
    %46 = vector.broadcast %cst_28 : f32 to vector<8x16xf32>
    %47 = arith.subf %46, %41 : vector<8x16xf32>
    %48 = arith.mulf %47, %45 : vector<8x16xf32>
    %cst_29 = arith.constant dense<0.000000e+00> : vector<8x144xf32>
    %49 = tpu.matmul %48, %20, %cst_29 {dimension_numbers = #tpu.dot_dimension_numbers<[1], [0], [0], [1], [0, 0, 1, 1], [], []>} : vector<8x16xf32>, vector<16x144xf32>, vector<8x144xf32> -> vector<8x144xf32>
    %50 = vector.extract_strided_slice %26 {offsets = [0, 48], sizes = [8, 48], strides = [1, 1]} : vector<8x144xf32> to vector<8x48xf32>
    %51 = arith.addf %50, %12 : vector<8x48xf32>
    %52 = vector.extract_strided_slice %49 {offsets = [0, 48], sizes = [8, 48], strides = [1, 1]} : vector<8x144xf32> to vector<8x48xf32>
    %53 = arith.addf %51, %52 : vector<8x48xf32>
    %54 = arith.addf %53, %24 : vector<8x48xf32>
    %55 = vector.extract_strided_slice %54 {offsets = [0, 0], sizes = [8, 16], strides = [1, 1]} : vector<8x48xf32> to vector<8x16xf32>
    %56 = arith.negf %55 : vector<8x16xf32>
    %57 = math.exp %56 : vector<8x16xf32>
    %cst_30 = arith.constant 1.000000e+00 : f32
    %58 = vector.broadcast %cst_30 : f32 to vector<8x16xf32>
    %59 = arith.addf %58, %57 : vector<8x16xf32>
    %60 = arith.divf %58, %59 : vector<8x16xf32>
    %61 = vector.extract_strided_slice %54 {offsets = [0, 16], sizes = [8, 16], strides = [1, 1]} : vector<8x48xf32> to vector<8x16xf32>
    %62 = arith.negf %61 : vector<8x16xf32>
    %63 = math.exp %62 : vector<8x16xf32>
    %cst_31 = arith.constant 1.000000e+00 : f32
    %64 = vector.broadcast %cst_31 : f32 to vector<8x16xf32>
    %65 = arith.addf %64, %63 : vector<8x16xf32>
    %66 = arith.divf %64, %65 : vector<8x16xf32>
    %67 = vector.extract_strided_slice %54 {offsets = [0, 32], sizes = [8, 16], strides = [1, 1]} : vector<8x48xf32> to vector<8x16xf32>
    %68 = arith.mulf %60, %18 : vector<8x16xf32>
    %69 = arith.addf %67, %68 : vector<8x16xf32>
    %70 = math.tanh %69 : vector<8x16xf32>
    %cst_32 = arith.constant 1.000000e+00 : f32
    %71 = vector.broadcast %cst_32 : f32 to vector<8x16xf32>
    %72 = arith.subf %71, %66 : vector<8x16xf32>
    %73 = arith.mulf %72, %70 : vector<8x16xf32>
    %cst_33 = arith.constant dense<0.000000e+00> : vector<8x96xf32>
    %74 = tpu.matmul %73, %21, %cst_33 {dimension_numbers = #tpu.dot_dimension_numbers<[1], [0], [0], [1], [0, 0, 1, 1], [], []>} : vector<8x16xf32>, vector<16x96xf32>, vector<8x96xf32> -> vector<8x96xf32>
    %75 = vector.extract_strided_slice %26 {offsets = [0, 96], sizes = [8, 48], strides = [1, 1]} : vector<8x144xf32> to vector<8x48xf32>
    %76 = arith.addf %75, %13 : vector<8x48xf32>
    %77 = vector.extract_strided_slice %49 {offsets = [0, 96], sizes = [8, 48], strides = [1, 1]} : vector<8x144xf32> to vector<8x48xf32>
    %78 = arith.addf %76, %77 : vector<8x48xf32>
    %79 = vector.extract_strided_slice %74 {offsets = [0, 48], sizes = [8, 48], strides = [1, 1]} : vector<8x96xf32> to vector<8x48xf32>
    %80 = arith.addf %78, %79 : vector<8x48xf32>
    %81 = arith.addf %80, %25 : vector<8x48xf32>
    %82 = vector.extract_strided_slice %81 {offsets = [0, 0], sizes = [8, 16], strides = [1, 1]} : vector<8x48xf32> to vector<8x16xf32>
    %83 = arith.negf %82 : vector<8x16xf32>
    %84 = math.exp %83 : vector<8x16xf32>
    %cst_34 = arith.constant 1.000000e+00 : f32
    %85 = vector.broadcast %cst_34 : f32 to vector<8x16xf32>
    %86 = arith.addf %85, %84 : vector<8x16xf32>
    %87 = arith.divf %85, %86 : vector<8x16xf32>
    %88 = vector.extract_strided_slice %81 {offsets = [0, 16], sizes = [8, 16], strides = [1, 1]} : vector<8x48xf32> to vector<8x16xf32>
    %89 = arith.negf %88 : vector<8x16xf32>
    %90 = math.exp %89 : vector<8x16xf32>
    %cst_35 = arith.constant 1.000000e+00 : f32
    %91 = vector.broadcast %cst_35 : f32 to vector<8x16xf32>
    %92 = arith.addf %91, %90 : vector<8x16xf32>
    %93 = arith.divf %91, %92 : vector<8x16xf32>
    %94 = vector.extract_strided_slice %81 {offsets = [0, 32], sizes = [8, 16], strides = [1, 1]} : vector<8x48xf32> to vector<8x16xf32>
    %95 = arith.mulf %87, %19 : vector<8x16xf32>
    %96 = arith.addf %94, %95 : vector<8x16xf32>
    %97 = math.tanh %96 : vector<8x16xf32>
    %cst_36 = arith.constant 1.000000e+00 : f32
    %98 = vector.broadcast %cst_36 : f32 to vector<8x16xf32>
    %99 = arith.subf %98, %93 : vector<8x16xf32>
    %100 = arith.mulf %99, %97 : vector<8x16xf32>
    %cst_37 = arith.constant dense<0.000000e+00> : vector<8x48xf32>
    %101 = tpu.matmul %100, %22, %cst_37 {dimension_numbers = #tpu.dot_dimension_numbers<[1], [0], [0], [1], [0, 0, 1, 1], [], []>} : vector<8x16xf32>, vector<16x48xf32>, vector<8x48xf32> -> vector<8x48xf32>
    %102 = tpu.concatenate %48, %73, %100 in 1 : vector<8x16xf32>, vector<8x16xf32>, vector<8x16xf32> -> vector<8x48xf32>
    %c0_38 = arith.constant 0 : index
    %c0_39 = arith.constant 0 : index
    %103 = vector.load %arg14[%c0_38, %c0_39] : memref<64x48xf32, #tpu.memory_space<vmem>>, vector<8x48xf32>
    tpu.vector_store %arg14[%c0_38, %c0_39], %102 {strides = array<i32>} : memref<64x48xf32, #tpu.memory_space<vmem>>, vector<8x48xf32>,
    %104 = vector.extract_strided_slice %49 {offsets = [0, 0], sizes = [8, 48], strides = [1, 1]} : vector<8x144xf32> to vector<8x48xf32>
    %105 = vector.extract_strided_slice %74 {offsets = [0, 0], sizes = [8, 48], strides = [1, 1]} : vector<8x96xf32> to vector<8x48xf32>
    %c8 = arith.constant 8 : index
    %c0_40 = arith.constant 0 : index
    %106 = vector.load %arg13[%c8, %c0_40] : memref<64x144xf32, #tpu.memory_space<vmem>>, vector<8x144xf32>
    %107 = vector.extract_strided_slice %106 {offsets = [0, 0], sizes = [8, 48], strides = [1, 1]} : vector<8x144xf32> to vector<8x48xf32>
    %108 = arith.addf %107, %11 : vector<8x48xf32>
    %109 = arith.addf %108, %104 : vector<8x48xf32>
    %110 = vector.extract_strided_slice %109 {offsets = [0, 0], sizes = [8, 16], strides = [1, 1]} : vector<8x48xf32> to vector<8x16xf32>
    %111 = arith.negf %110 : vector<8x16xf32>
    %112 = math.exp %111 : vector<8x16xf32>
    %cst_41 = arith.constant 1.000000e+00 : f32
    %113 = vector.broadcast %cst_41 : f32 to vector<8x16xf32>
    %114 = arith.addf %113, %112 : vector<8x16xf32>
    %115 = arith.divf %113, %114 : vector<8x16xf32>
    %116 = vector.extract_strided_slice %109 {offsets = [0, 16], sizes = [8, 16], strides = [1, 1]} : vector<8x48xf32> to vector<8x16xf32>
    %117 = arith.negf %116 : vector<8x16xf32>
    %118 = math.exp %117 : vector<8x16xf32>
    %cst_42 = arith.constant 1.000000e+00 : f32
    %119 = vector.broadcast %cst_42 : f32 to vector<8x16xf32>
    %120 = arith.addf %119, %118 : vector<8x16xf32>
    %121 = arith.divf %119, %120 : vector<8x16xf32>
    %122 = vector.extract_strided_slice %109 {offsets = [0, 32], sizes = [8, 16], strides = [1, 1]} : vector<8x48xf32> to vector<8x16xf32>
    %123 = arith.mulf %115, %17 : vector<8x16xf32>
    %124 = arith.addf %122, %123 : vector<8x16xf32>
    %125 = math.tanh %124 : vector<8x16xf32>
    %cst_43 = arith.constant 1.000000e+00 : f32
    %126 = vector.broadcast %cst_43 : f32 to vector<8x16xf32>
    %127 = arith.subf %126, %121 : vector<8x16xf32>
    %128 = arith.mulf %127, %125 : vector<8x16xf32>
    %cst_44 = arith.constant dense<0.000000e+00> : vector<8x144xf32>
    %129 = tpu.matmul %128, %20, %cst_44 {dimension_numbers = #tpu.dot_dimension_numbers<[1], [0], [0], [1], [0, 0, 1, 1], [], []>} : vector<8x16xf32>, vector<16x144xf32>, vector<8x144xf32> -> vector<8x144xf32>
    %130 = vector.extract_strided_slice %106 {offsets = [0, 48], sizes = [8, 48], strides = [1, 1]} : vector<8x144xf32> to vector<8x48xf32>
    %131 = arith.addf %130, %12 : vector<8x48xf32>
    %132 = vector.extract_strided_slice %129 {offsets = [0, 48], sizes = [8, 48], strides = [1, 1]} : vector<8x144xf32> to vector<8x48xf32>
    %133 = arith.addf %131, %132 : vector<8x48xf32>
    %134 = arith.addf %133, %105 : vector<8x48xf32>
    %135 = vector.extract_strided_slice %134 {offsets = [0, 0], sizes = [8, 16], strides = [1, 1]} : vector<8x48xf32> to vector<8x16xf32>
    %136 = arith.negf %135 : vector<8x16xf32>
    %137 = math.exp %136 : vector<8x16xf32>
    %cst_45 = arith.constant 1.000000e+00 : f32
    %138 = vector.broadcast %cst_45 : f32 to vector<8x16xf32>
    %139 = arith.addf %138, %137 : vector<8x16xf32>
    %140 = arith.divf %138, %139 : vector<8x16xf32>
    %141 = vector.extract_strided_slice %134 {offsets = [0, 16], sizes = [8, 16], strides = [1, 1]} : vector<8x48xf32> to vector<8x16xf32>
    %142 = arith.negf %141 : vector<8x16xf32>
    %143 = math.exp %142 : vector<8x16xf32>
    %cst_46 = arith.constant 1.000000e+00 : f32
    %144 = vector.broadcast %cst_46 : f32 to vector<8x16xf32>
    %145 = arith.addf %144, %143 : vector<8x16xf32>
    %146 = arith.divf %144, %145 : vector<8x16xf32>
    %147 = vector.extract_strided_slice %134 {offsets = [0, 32], sizes = [8, 16], strides = [1, 1]} : vector<8x48xf32> to vector<8x16xf32>
    %148 = arith.mulf %140, %18 : vector<8x16xf32>
    %149 = arith.addf %147, %148 : vector<8x16xf32>
    %150 = math.tanh %149 : vector<8x16xf32>
    %cst_47 = arith.constant 1.000000e+00 : f32
    %151 = vector.broadcast %cst_47 : f32 to vector<8x16xf32>
    %152 = arith.subf %151, %146 : vector<8x16xf32>
    %153 = arith.mulf %152, %150 : vector<8x16xf32>
    %cst_48 = arith.constant dense<0.000000e+00> : vector<8x96xf32>
    %154 = tpu.matmul %153, %21, %cst_48 {dimension_numbers = #tpu.dot_dimension_numbers<[1], [0], [0], [1], [0, 0, 1, 1], [], []>} : vector<8x16xf32>, vector<16x96xf32>, vector<8x96xf32> -> vector<8x96xf32>
    %155 = vector.extract_strided_slice %106 {offsets = [0, 96], sizes = [8, 48], strides = [1, 1]} : vector<8x144xf32> to vector<8x48xf32>
    %156 = arith.addf %155, %13 : vector<8x48xf32>
    %157 = vector.extract_strided_slice %129 {offsets = [0, 96], sizes = [8, 48], strides = [1, 1]} : vector<8x144xf32> to vector<8x48xf32>
    %158 = arith.addf %156, %157 : vector<8x48xf32>
    %159 = vector.extract_strided_slice %154 {offsets = [0, 48], sizes = [8, 48], strides = [1, 1]} : vector<8x96xf32> to vector<8x48xf32>
    %160 = arith.addf %158, %159 : vector<8x48xf32>
    %161 = arith.addf %160, %101 : vector<8x48xf32>
    %162 = vector.extract_strided_slice %161 {offsets = [0, 0], sizes = [8, 16], strides = [1, 1]} : vector<8x48xf32> to vector<8x16xf32>
    %163 = arith.negf %162 : vector<8x16xf32>
    %164 = math.exp %163 : vector<8x16xf32>
    %cst_49 = arith.constant 1.000000e+00 : f32
    %165 = vector.broadcast %cst_49 : f32 to vector<8x16xf32>
    %166 = arith.addf %165, %164 : vector<8x16xf32>
    %167 = arith.divf %165, %166 : vector<8x16xf32>
    %168 = vector.extract_strided_slice %161 {offsets = [0, 16], sizes = [8, 16], strides = [1, 1]} : vector<8x48xf32> to vector<8x16xf32>
    %169 = arith.negf %168 : vector<8x16xf32>
    %170 = math.exp %169 : vector<8x16xf32>
    %cst_50 = arith.constant 1.000000e+00 : f32
    %171 = vector.broadcast %cst_50 : f32 to vector<8x16xf32>
    %172 = arith.addf %171, %170 : vector<8x16xf32>
    %173 = arith.divf %171, %172 : vector<8x16xf32>
    %174 = vector.extract_strided_slice %161 {offsets = [0, 32], sizes = [8, 16], strides = [1, 1]} : vector<8x48xf32> to vector<8x16xf32>
    %175 = arith.mulf %167, %19 : vector<8x16xf32>
    %176 = arith.addf %174, %175 : vector<8x16xf32>
    %177 = math.tanh %176 : vector<8x16xf32>
    %cst_51 = arith.constant 1.000000e+00 : f32
    %178 = vector.broadcast %cst_51 : f32 to vector<8x16xf32>
    %179 = arith.subf %178, %173 : vector<8x16xf32>
    %180 = arith.mulf %179, %177 : vector<8x16xf32>
    %cst_52 = arith.constant dense<0.000000e+00> : vector<8x48xf32>
    %181 = tpu.matmul %180, %22, %cst_52 {dimension_numbers = #tpu.dot_dimension_numbers<[1], [0], [0], [1], [0, 0, 1, 1], [], []>} : vector<8x16xf32>, vector<16x48xf32>, vector<8x48xf32> -> vector<8x48xf32>
    %182 = tpu.concatenate %128, %153, %180 in 1 : vector<8x16xf32>, vector<8x16xf32>, vector<8x16xf32> -> vector<8x48xf32>
    %c8_53 = arith.constant 8 : index
    %c0_54 = arith.constant 0 : index
    %183 = vector.load %arg14[%c8_53, %c0_54] : memref<64x48xf32, #tpu.memory_space<vmem>>, vector<8x48xf32>
    tpu.vector_store %arg14[%c8_53, %c0_54], %182 {strides = array<i32>} : memref<64x48xf32, #tpu.memory_space<vmem>>, vector<8x48xf32>,
    %184 = vector.extract_strided_slice %129 {offsets = [0, 0], sizes = [8, 48], strides = [1, 1]} : vector<8x144xf32> to vector<8x48xf32>
    %185 = vector.extract_strided_slice %154 {offsets = [0, 0], sizes = [8, 48], strides = [1, 1]} : vector<8x96xf32> to vector<8x48xf32>
    %c16 = arith.constant 16 : index
    %c0_55 = arith.constant 0 : index
    %186 = vector.load %arg13[%c16, %c0_55] : memref<64x144xf32, #tpu.memory_space<vmem>>, vector<8x144xf32>
    %187 = vector.extract_strided_slice %186 {offsets = [0, 0], sizes = [8, 48], strides = [1, 1]} : vector<8x144xf32> to vector<8x48xf32>
    %188 = arith.addf %187, %11 : vector<8x48xf32>
    %189 = arith.addf %188, %184 : vector<8x48xf32>
    %190 = vector.extract_strided_slice %189 {offsets = [0, 0], sizes = [8, 16], strides = [1, 1]} : vector<8x48xf32> to vector<8x16xf32>
    %191 = arith.negf %190 : vector<8x16xf32>
    %192 = math.exp %191 : vector<8x16xf32>
    %cst_56 = arith.constant 1.000000e+00 : f32
    %193 = vector.broadcast %cst_56 : f32 to vector<8x16xf32>
    %194 = arith.addf %193, %192 : vector<8x16xf32>
    %195 = arith.divf %193, %194 : vector<8x16xf32>
    %196 = vector.extract_strided_slice %189 {offsets = [0, 16], sizes = [8, 16], strides = [1, 1]} : vector<8x48xf32> to vector<8x16xf32>
    %197 = arith.negf %196 : vector<8x16xf32>
    %198 = math.exp %197 : vector<8x16xf32>
    %cst_57 = arith.constant 1.000000e+00 : f32
    %199 = vector.broadcast %cst_57 : f32 to vector<8x16xf32>
    %200 = arith.addf %199, %198 : vector<8x16xf32>
    %201 = arith.divf %199, %200 : vector<8x16xf32>
    %202 = vector.extract_strided_slice %189 {offsets = [0, 32], sizes = [8, 16], strides = [1, 1]} : vector<8x48xf32> to vector<8x16xf32>
    %203 = arith.mulf %195, %17 : vector<8x16xf32>
    %204 = arith.addf %202, %203 : vector<8x16xf32>
    %205 = math.tanh %204 : vector<8x16xf32>
    %cst_58 = arith.constant 1.000000e+00 : f32
    %206 = vector.broadcast %cst_58 : f32 to vector<8x16xf32>
    %207 = arith.subf %206, %201 : vector<8x16xf32>
    %208 = arith.mulf %207, %205 : vector<8x16xf32>
    %cst_59 = arith.constant dense<0.000000e+00> : vector<8x144xf32>
    %209 = tpu.matmul %208, %20, %cst_59 {dimension_numbers = #tpu.dot_dimension_numbers<[1], [0], [0], [1], [0, 0, 1, 1], [], []>} : vector<8x16xf32>, vector<16x144xf32>, vector<8x144xf32> -> vector<8x144xf32>
    %210 = vector.extract_strided_slice %186 {offsets = [0, 48], sizes = [8, 48], strides = [1, 1]} : vector<8x144xf32> to vector<8x48xf32>
    %211 = arith.addf %210, %12 : vector<8x48xf32>
    %212 = vector.extract_strided_slice %209 {offsets = [0, 48], sizes = [8, 48], strides = [1, 1]} : vector<8x144xf32> to vector<8x48xf32>
    %213 = arith.addf %211, %212 : vector<8x48xf32>
    %214 = arith.addf %213, %185 : vector<8x48xf32>
    %215 = vector.extract_strided_slice %214 {offsets = [0, 0], sizes = [8, 16], strides = [1, 1]} : vector<8x48xf32> to vector<8x16xf32>
    %216 = arith.negf %215 : vector<8x16xf32>
    %217 = math.exp %216 : vector<8x16xf32>
    %cst_60 = arith.constant 1.000000e+00 : f32
    %218 = vector.broadcast %cst_60 : f32 to vector<8x16xf32>
    %219 = arith.addf %218, %217 : vector<8x16xf32>
    %220 = arith.divf %218, %219 : vector<8x16xf32>
    %221 = vector.extract_strided_slice %214 {offsets = [0, 16], sizes = [8, 16], strides = [1, 1]} : vector<8x48xf32> to vector<8x16xf32>
    %222 = arith.negf %221 : vector<8x16xf32>
    %223 = math.exp %222 : vector<8x16xf32>
    %cst_61 = arith.constant 1.000000e+00 : f32
    %224 = vector.broadcast %cst_61 : f32 to vector<8x16xf32>
    %225 = arith.addf %224, %223 : vector<8x16xf32>
    %226 = arith.divf %224, %225 : vector<8x16xf32>
    %227 = vector.extract_strided_slice %214 {offsets = [0, 32], sizes = [8, 16], strides = [1, 1]} : vector<8x48xf32> to vector<8x16xf32>
    %228 = arith.mulf %220, %18 : vector<8x16xf32>
    %229 = arith.addf %227, %228 : vector<8x16xf32>
    %230 = math.tanh %229 : vector<8x16xf32>
    %cst_62 = arith.constant 1.000000e+00 : f32
    %231 = vector.broadcast %cst_62 : f32 to vector<8x16xf32>
    %232 = arith.subf %231, %226 : vector<8x16xf32>
    %233 = arith.mulf %232, %230 : vector<8x16xf32>
    %cst_63 = arith.constant dense<0.000000e+00> : vector<8x96xf32>
    %234 = tpu.matmul %233, %21, %cst_63 {dimension_numbers = #tpu.dot_dimension_numbers<[1], [0], [0], [1], [0, 0, 1, 1], [], []>} : vector<8x16xf32>, vector<16x96xf32>, vector<8x96xf32> -> vector<8x96xf32>
    %235 = vector.extract_strided_slice %186 {offsets = [0, 96], sizes = [8, 48], strides = [1, 1]} : vector<8x144xf32> to vector<8x48xf32>
    %236 = arith.addf %235, %13 : vector<8x48xf32>
    %237 = vector.extract_strided_slice %209 {offsets = [0, 96], sizes = [8, 48], strides = [1, 1]} : vector<8x144xf32> to vector<8x48xf32>
    %238 = arith.addf %236, %237 : vector<8x48xf32>
    %239 = vector.extract_strided_slice %234 {offsets = [0, 48], sizes = [8, 48], strides = [1, 1]} : vector<8x96xf32> to vector<8x48xf32>
    %240 = arith.addf %238, %239 : vector<8x48xf32>
    %241 = arith.addf %240, %181 : vector<8x48xf32>
    %242 = vector.extract_strided_slice %241 {offsets = [0, 0], sizes = [8, 16], strides = [1, 1]} : vector<8x48xf32> to vector<8x16xf32>
    %243 = arith.negf %242 : vector<8x16xf32>
    %244 = math.exp %243 : vector<8x16xf32>
    %cst_64 = arith.constant 1.000000e+00 : f32
    %245 = vector.broadcast %cst_64 : f32 to vector<8x16xf32>
    %246 = arith.addf %245, %244 : vector<8x16xf32>
    %247 = arith.divf %245, %246 : vector<8x16xf32>
    %248 = vector.extract_strided_slice %241 {offsets = [0, 16], sizes = [8, 16], strides = [1, 1]} : vector<8x48xf32> to vector<8x16xf32>
    %249 = arith.negf %248 : vector<8x16xf32>
    %250 = math.exp %249 : vector<8x16xf32>
    %cst_65 = arith.constant 1.000000e+00 : f32
    %251 = vector.broadcast %cst_65 : f32 to vector<8x16xf32>
    %252 = arith.addf %251, %250 : vector<8x16xf32>
    %253 = arith.divf %251, %252 : vector<8x16xf32>
    %254 = vector.extract_strided_slice %241 {offsets = [0, 32], sizes = [8, 16], strides = [1, 1]} : vector<8x48xf32> to vector<8x16xf32>
    %255 = arith.mulf %247, %19 : vector<8x16xf32>
    %256 = arith.addf %254, %255 : vector<8x16xf32>
    %257 = math.tanh %256 : vector<8x16xf32>
    %cst_66 = arith.constant 1.000000e+00 : f32
    %258 = vector.broadcast %cst_66 : f32 to vector<8x16xf32>
    %259 = arith.subf %258, %253 : vector<8x16xf32>
    %260 = arith.mulf %259, %257 : vector<8x16xf32>
    %cst_67 = arith.constant dense<0.000000e+00> : vector<8x48xf32>
    %261 = tpu.matmul %260, %22, %cst_67 {dimension_numbers = #tpu.dot_dimension_numbers<[1], [0], [0], [1], [0, 0, 1, 1], [], []>} : vector<8x16xf32>, vector<16x48xf32>, vector<8x48xf32> -> vector<8x48xf32>
    %262 = tpu.concatenate %208, %233, %260 in 1 : vector<8x16xf32>, vector<8x16xf32>, vector<8x16xf32> -> vector<8x48xf32>
    %c16_68 = arith.constant 16 : index
    %c0_69 = arith.constant 0 : index
    %263 = vector.load %arg14[%c16_68, %c0_69] : memref<64x48xf32, #tpu.memory_space<vmem>>, vector<8x48xf32>
    tpu.vector_store %arg14[%c16_68, %c0_69], %262 {strides = array<i32>} : memref<64x48xf32, #tpu.memory_space<vmem>>, vector<8x48xf32>,
    %264 = vector.extract_strided_slice %209 {offsets = [0, 0], sizes = [8, 48], strides = [1, 1]} : vector<8x144xf32> to vector<8x48xf32>
    %265 = vector.extract_strided_slice %234 {offsets = [0, 0], sizes = [8, 48], strides = [1, 1]} : vector<8x96xf32> to vector<8x48xf32>
    %c24 = arith.constant 24 : index
    %c0_70 = arith.constant 0 : index
    %266 = vector.load %arg13[%c24, %c0_70] : memref<64x144xf32, #tpu.memory_space<vmem>>, vector<8x144xf32>
    %267 = vector.extract_strided_slice %266 {offsets = [0, 0], sizes = [8, 48], strides = [1, 1]} : vector<8x144xf32> to vector<8x48xf32>
    %268 = arith.addf %267, %11 : vector<8x48xf32>
    %269 = arith.addf %268, %264 : vector<8x48xf32>
    %270 = vector.extract_strided_slice %269 {offsets = [0, 0], sizes = [8, 16], strides = [1, 1]} : vector<8x48xf32> to vector<8x16xf32>
    %271 = arith.negf %270 : vector<8x16xf32>
    %272 = math.exp %271 : vector<8x16xf32>
    %cst_71 = arith.constant 1.000000e+00 : f32
    %273 = vector.broadcast %cst_71 : f32 to vector<8x16xf32>
    %274 = arith.addf %273, %272 : vector<8x16xf32>
    %275 = arith.divf %273, %274 : vector<8x16xf32>
    %276 = vector.extract_strided_slice %269 {offsets = [0, 16], sizes = [8, 16], strides = [1, 1]} : vector<8x48xf32> to vector<8x16xf32>
    %277 = arith.negf %276 : vector<8x16xf32>
    %278 = math.exp %277 : vector<8x16xf32>
    %cst_72 = arith.constant 1.000000e+00 : f32
    %279 = vector.broadcast %cst_72 : f32 to vector<8x16xf32>
    %280 = arith.addf %279, %278 : vector<8x16xf32>
    %281 = arith.divf %279, %280 : vector<8x16xf32>
    %282 = vector.extract_strided_slice %269 {offsets = [0, 32], sizes = [8, 16], strides = [1, 1]} : vector<8x48xf32> to vector<8x16xf32>
    %283 = arith.mulf %275, %17 : vector<8x16xf32>
    %284 = arith.addf %282, %283 : vector<8x16xf32>
    %285 = math.tanh %284 : vector<8x16xf32>
    %cst_73 = arith.constant 1.000000e+00 : f32
    %286 = vector.broadcast %cst_73 : f32 to vector<8x16xf32>
    %287 = arith.subf %286, %281 : vector<8x16xf32>
    %288 = arith.mulf %287, %285 : vector<8x16xf32>
    %cst_74 = arith.constant dense<0.000000e+00> : vector<8x144xf32>
    %289 = tpu.matmul %288, %20, %cst_74 {dimension_numbers = #tpu.dot_dimension_numbers<[1], [0], [0], [1], [0, 0, 1, 1], [], []>} : vector<8x16xf32>, vector<16x144xf32>, vector<8x144xf32> -> vector<8x144xf32>
    %290 = vector.extract_strided_slice %266 {offsets = [0, 48], sizes = [8, 48], strides = [1, 1]} : vector<8x144xf32> to vector<8x48xf32>
    %291 = arith.addf %290, %12 : vector<8x48xf32>
    %292 = vector.extract_strided_slice %289 {offsets = [0, 48], sizes = [8, 48], strides = [1, 1]} : vector<8x144xf32> to vector<8x48xf32>
    %293 = arith.addf %291, %292 : vector<8x48xf32>
    %294 = arith.addf %293, %265 : vector<8x48xf32>
    %295 = vector.extract_strided_slice %294 {offsets = [0, 0], sizes = [8, 16], strides = [1, 1]} : vector<8x48xf32> to vector<8x16xf32>
    %296 = arith.negf %295 : vector<8x16xf32>
    %297 = math.exp %296 : vector<8x16xf32>
    %cst_75 = arith.constant 1.000000e+00 : f32
    %298 = vector.broadcast %cst_75 : f32 to vector<8x16xf32>
    %299 = arith.addf %298, %297 : vector<8x16xf32>
    %300 = arith.divf %298, %299 : vector<8x16xf32>
    %301 = vector.extract_strided_slice %294 {offsets = [0, 16], sizes = [8, 16], strides = [1, 1]} : vector<8x48xf32> to vector<8x16xf32>
    %302 = arith.negf %301 : vector<8x16xf32>
    %303 = math.exp %302 : vector<8x16xf32>
    %cst_76 = arith.constant 1.000000e+00 : f32
    %304 = vector.broadcast %cst_76 : f32 to vector<8x16xf32>
    %305 = arith.addf %304, %303 : vector<8x16xf32>
    %306 = arith.divf %304, %305 : vector<8x16xf32>
    %307 = vector.extract_strided_slice %294 {offsets = [0, 32], sizes = [8, 16], strides = [1, 1]} : vector<8x48xf32> to vector<8x16xf32>
    %308 = arith.mulf %300, %18 : vector<8x16xf32>
    %309 = arith.addf %307, %308 : vector<8x16xf32>
    %310 = math.tanh %309 : vector<8x16xf32>
    %cst_77 = arith.constant 1.000000e+00 : f32
    %311 = vector.broadcast %cst_77 : f32 to vector<8x16xf32>
    %312 = arith.subf %311, %306 : vector<8x16xf32>
    %313 = arith.mulf %312, %310 : vector<8x16xf32>
    %cst_78 = arith.constant dense<0.000000e+00> : vector<8x96xf32>
    %314 = tpu.matmul %313, %21, %cst_78 {dimension_numbers = #tpu.dot_dimension_numbers<[1], [0], [0], [1], [0, 0, 1, 1], [], []>} : vector<8x16xf32>, vector<16x96xf32>, vector<8x96xf32> -> vector<8x96xf32>
    %315 = vector.extract_strided_slice %266 {offsets = [0, 96], sizes = [8, 48], strides = [1, 1]} : vector<8x144xf32> to vector<8x48xf32>
    %316 = arith.addf %315, %13 : vector<8x48xf32>
    %317 = vector.extract_strided_slice %289 {offsets = [0, 96], sizes = [8, 48], strides = [1, 1]} : vector<8x144xf32> to vector<8x48xf32>
    %318 = arith.addf %316, %317 : vector<8x48xf32>
    %319 = vector.extract_strided_slice %314 {offsets = [0, 48], sizes = [8, 48], strides = [1, 1]} : vector<8x96xf32> to vector<8x48xf32>
    %320 = arith.addf %318, %319 : vector<8x48xf32>
    %321 = arith.addf %320, %261 : vector<8x48xf32>
    %322 = vector.extract_strided_slice %321 {offsets = [0, 0], sizes = [8, 16], strides = [1, 1]} : vector<8x48xf32> to vector<8x16xf32>
    %323 = arith.negf %322 : vector<8x16xf32>
    %324 = math.exp %323 : vector<8x16xf32>
    %cst_79 = arith.constant 1.000000e+00 : f32
    %325 = vector.broadcast %cst_79 : f32 to vector<8x16xf32>
    %326 = arith.addf %325, %324 : vector<8x16xf32>
    %327 = arith.divf %325, %326 : vector<8x16xf32>
    %328 = vector.extract_strided_slice %321 {offsets = [0, 16], sizes = [8, 16], strides = [1, 1]} : vector<8x48xf32> to vector<8x16xf32>
    %329 = arith.negf %328 : vector<8x16xf32>
    %330 = math.exp %329 : vector<8x16xf32>
    %cst_80 = arith.constant 1.000000e+00 : f32
    %331 = vector.broadcast %cst_80 : f32 to vector<8x16xf32>
    %332 = arith.addf %331, %330 : vector<8x16xf32>
    %333 = arith.divf %331, %332 : vector<8x16xf32>
    %334 = vector.extract_strided_slice %321 {offsets = [0, 32], sizes = [8, 16], strides = [1, 1]} : vector<8x48xf32> to vector<8x16xf32>
    %335 = arith.mulf %327, %19 : vector<8x16xf32>
    %336 = arith.addf %334, %335 : vector<8x16xf32>
    %337 = math.tanh %336 : vector<8x16xf32>
    %cst_81 = arith.constant 1.000000e+00 : f32
    %338 = vector.broadcast %cst_81 : f32 to vector<8x16xf32>
    %339 = arith.subf %338, %333 : vector<8x16xf32>
    %340 = arith.mulf %339, %337 : vector<8x16xf32>
    %cst_82 = arith.constant dense<0.000000e+00> : vector<8x48xf32>
    %341 = tpu.matmul %340, %22, %cst_82 {dimension_numbers = #tpu.dot_dimension_numbers<[1], [0], [0], [1], [0, 0, 1, 1], [], []>} : vector<8x16xf32>, vector<16x48xf32>, vector<8x48xf32> -> vector<8x48xf32>
    %342 = tpu.concatenate %288, %313, %340 in 1 : vector<8x16xf32>, vector<8x16xf32>, vector<8x16xf32> -> vector<8x48xf32>
    %c24_83 = arith.constant 24 : index
    %c0_84 = arith.constant 0 : index
    %343 = vector.load %arg14[%c24_83, %c0_84] : memref<64x48xf32, #tpu.memory_space<vmem>>, vector<8x48xf32>
    tpu.vector_store %arg14[%c24_83, %c0_84], %342 {strides = array<i32>} : memref<64x48xf32, #tpu.memory_space<vmem>>, vector<8x48xf32>,
    %344 = vector.extract_strided_slice %289 {offsets = [0, 0], sizes = [8, 48], strides = [1, 1]} : vector<8x144xf32> to vector<8x48xf32>
    %345 = vector.extract_strided_slice %314 {offsets = [0, 0], sizes = [8, 48], strides = [1, 1]} : vector<8x96xf32> to vector<8x48xf32>
    %c32 = arith.constant 32 : index
    %c0_85 = arith.constant 0 : index
    %346 = vector.load %arg13[%c32, %c0_85] : memref<64x144xf32, #tpu.memory_space<vmem>>, vector<8x144xf32>
    %347 = vector.extract_strided_slice %346 {offsets = [0, 0], sizes = [8, 48], strides = [1, 1]} : vector<8x144xf32> to vector<8x48xf32>
    %348 = arith.addf %347, %11 : vector<8x48xf32>
    %349 = arith.addf %348, %344 : vector<8x48xf32>
    %350 = vector.extract_strided_slice %349 {offsets = [0, 0], sizes = [8, 16], strides = [1, 1]} : vector<8x48xf32> to vector<8x16xf32>
    %351 = arith.negf %350 : vector<8x16xf32>
    %352 = math.exp %351 : vector<8x16xf32>
    %cst_86 = arith.constant 1.000000e+00 : f32
    %353 = vector.broadcast %cst_86 : f32 to vector<8x16xf32>
    %354 = arith.addf %353, %352 : vector<8x16xf32>
    %355 = arith.divf %353, %354 : vector<8x16xf32>
    %356 = vector.extract_strided_slice %349 {offsets = [0, 16], sizes = [8, 16], strides = [1, 1]} : vector<8x48xf32> to vector<8x16xf32>
    %357 = arith.negf %356 : vector<8x16xf32>
    %358 = math.exp %357 : vector<8x16xf32>
    %cst_87 = arith.constant 1.000000e+00 : f32
    %359 = vector.broadcast %cst_87 : f32 to vector<8x16xf32>
    %360 = arith.addf %359, %358 : vector<8x16xf32>
    %361 = arith.divf %359, %360 : vector<8x16xf32>
    %362 = vector.extract_strided_slice %349 {offsets = [0, 32], sizes = [8, 16], strides = [1, 1]} : vector<8x48xf32> to vector<8x16xf32>
    %363 = arith.mulf %355, %17 : vector<8x16xf32>
    %364 = arith.addf %362, %363 : vector<8x16xf32>
    %365 = math.tanh %364 : vector<8x16xf32>
    %cst_88 = arith.constant 1.000000e+00 : f32
    %366 = vector.broadcast %cst_88 : f32 to vector<8x16xf32>
    %367 = arith.subf %366, %361 : vector<8x16xf32>
    %368 = arith.mulf %367, %365 : vector<8x16xf32>
    %cst_89 = arith.constant dense<0.000000e+00> : vector<8x144xf32>
    %369 = tpu.matmul %368, %20, %cst_89 {dimension_numbers = #tpu.dot_dimension_numbers<[1], [0], [0], [1], [0, 0, 1, 1], [], []>} : vector<8x16xf32>, vector<16x144xf32>, vector<8x144xf32> -> vector<8x144xf32>
    %370 = vector.extract_strided_slice %346 {offsets = [0, 48], sizes = [8, 48], strides = [1, 1]} : vector<8x144xf32> to vector<8x48xf32>
    %371 = arith.addf %370, %12 : vector<8x48xf32>
    %372 = vector.extract_strided_slice %369 {offsets = [0, 48], sizes = [8, 48], strides = [1, 1]} : vector<8x144xf32> to vector<8x48xf32>
    %373 = arith.addf %371, %372 : vector<8x48xf32>
    %374 = arith.addf %373, %345 : vector<8x48xf32>
    %375 = vector.extract_strided_slice %374 {offsets = [0, 0], sizes = [8, 16], strides = [1, 1]} : vector<8x48xf32> to vector<8x16xf32>
    %376 = arith.negf %375 : vector<8x16xf32>
    %377 = math.exp %376 : vector<8x16xf32>
    %cst_90 = arith.constant 1.000000e+00 : f32
    %378 = vector.broadcast %cst_90 : f32 to vector<8x16xf32>
    %379 = arith.addf %378, %377 : vector<8x16xf32>
    %380 = arith.divf %378, %379 : vector<8x16xf32>
    %381 = vector.extract_strided_slice %374 {offsets = [0, 16], sizes = [8, 16], strides = [1, 1]} : vector<8x48xf32> to vector<8x16xf32>
    %382 = arith.negf %381 : vector<8x16xf32>
    %383 = math.exp %382 : vector<8x16xf32>
    %cst_91 = arith.constant 1.000000e+00 : f32
    %384 = vector.broadcast %cst_91 : f32 to vector<8x16xf32>
    %385 = arith.addf %384, %383 : vector<8x16xf32>
    %386 = arith.divf %384, %385 : vector<8x16xf32>
    %387 = vector.extract_strided_slice %374 {offsets = [0, 32], sizes = [8, 16], strides = [1, 1]} : vector<8x48xf32> to vector<8x16xf32>
    %388 = arith.mulf %380, %18 : vector<8x16xf32>
    %389 = arith.addf %387, %388 : vector<8x16xf32>
    %390 = math.tanh %389 : vector<8x16xf32>
    %cst_92 = arith.constant 1.000000e+00 : f32
    %391 = vector.broadcast %cst_92 : f32 to vector<8x16xf32>
    %392 = arith.subf %391, %386 : vector<8x16xf32>
    %393 = arith.mulf %392, %390 : vector<8x16xf32>
    %cst_93 = arith.constant dense<0.000000e+00> : vector<8x96xf32>
    %394 = tpu.matmul %393, %21, %cst_93 {dimension_numbers = #tpu.dot_dimension_numbers<[1], [0], [0], [1], [0, 0, 1, 1], [], []>} : vector<8x16xf32>, vector<16x96xf32>, vector<8x96xf32> -> vector<8x96xf32>
    %395 = vector.extract_strided_slice %346 {offsets = [0, 96], sizes = [8, 48], strides = [1, 1]} : vector<8x144xf32> to vector<8x48xf32>
    %396 = arith.addf %395, %13 : vector<8x48xf32>
    %397 = vector.extract_strided_slice %369 {offsets = [0, 96], sizes = [8, 48], strides = [1, 1]} : vector<8x144xf32> to vector<8x48xf32>
    %398 = arith.addf %396, %397 : vector<8x48xf32>
    %399 = vector.extract_strided_slice %394 {offsets = [0, 48], sizes = [8, 48], strides = [1, 1]} : vector<8x96xf32> to vector<8x48xf32>
    %400 = arith.addf %398, %399 : vector<8x48xf32>
    %401 = arith.addf %400, %341 : vector<8x48xf32>
    %402 = vector.extract_strided_slice %401 {offsets = [0, 0], sizes = [8, 16], strides = [1, 1]} : vector<8x48xf32> to vector<8x16xf32>
    %403 = arith.negf %402 : vector<8x16xf32>
    %404 = math.exp %403 : vector<8x16xf32>
    %cst_94 = arith.constant 1.000000e+00 : f32
    %405 = vector.broadcast %cst_94 : f32 to vector<8x16xf32>
    %406 = arith.addf %405, %404 : vector<8x16xf32>
    %407 = arith.divf %405, %406 : vector<8x16xf32>
    %408 = vector.extract_strided_slice %401 {offsets = [0, 16], sizes = [8, 16], strides = [1, 1]} : vector<8x48xf32> to vector<8x16xf32>
    %409 = arith.negf %408 : vector<8x16xf32>
    %410 = math.exp %409 : vector<8x16xf32>
    %cst_95 = arith.constant 1.000000e+00 : f32
    %411 = vector.broadcast %cst_95 : f32 to vector<8x16xf32>
    %412 = arith.addf %411, %410 : vector<8x16xf32>
    %413 = arith.divf %411, %412 : vector<8x16xf32>
    %414 = vector.extract_strided_slice %401 {offsets = [0, 32], sizes = [8, 16], strides = [1, 1]} : vector<8x48xf32> to vector<8x16xf32>
    %415 = arith.mulf %407, %19 : vector<8x16xf32>
    %416 = arith.addf %414, %415 : vector<8x16xf32>
    %417 = math.tanh %416 : vector<8x16xf32>
    %cst_96 = arith.constant 1.000000e+00 : f32
    %418 = vector.broadcast %cst_96 : f32 to vector<8x16xf32>
    %419 = arith.subf %418, %413 : vector<8x16xf32>
    %420 = arith.mulf %419, %417 : vector<8x16xf32>
    %cst_97 = arith.constant dense<0.000000e+00> : vector<8x48xf32>
    %421 = tpu.matmul %420, %22, %cst_97 {dimension_numbers = #tpu.dot_dimension_numbers<[1], [0], [0], [1], [0, 0, 1, 1], [], []>} : vector<8x16xf32>, vector<16x48xf32>, vector<8x48xf32> -> vector<8x48xf32>
    %422 = tpu.concatenate %368, %393, %420 in 1 : vector<8x16xf32>, vector<8x16xf32>, vector<8x16xf32> -> vector<8x48xf32>
    %c32_98 = arith.constant 32 : index
    %c0_99 = arith.constant 0 : index
    %423 = vector.load %arg14[%c32_98, %c0_99] : memref<64x48xf32, #tpu.memory_space<vmem>>, vector<8x48xf32>
    tpu.vector_store %arg14[%c32_98, %c0_99], %422 {strides = array<i32>} : memref<64x48xf32, #tpu.memory_space<vmem>>, vector<8x48xf32>,
    %424 = vector.extract_strided_slice %369 {offsets = [0, 0], sizes = [8, 48], strides = [1, 1]} : vector<8x144xf32> to vector<8x48xf32>
    %425 = vector.extract_strided_slice %394 {offsets = [0, 0], sizes = [8, 48], strides = [1, 1]} : vector<8x96xf32> to vector<8x48xf32>
    %c40 = arith.constant 40 : index
    %c0_100 = arith.constant 0 : index
    %426 = vector.load %arg13[%c40, %c0_100] : memref<64x144xf32, #tpu.memory_space<vmem>>, vector<8x144xf32>
    %427 = vector.extract_strided_slice %426 {offsets = [0, 0], sizes = [8, 48], strides = [1, 1]} : vector<8x144xf32> to vector<8x48xf32>
    %428 = arith.addf %427, %11 : vector<8x48xf32>
    %429 = arith.addf %428, %424 : vector<8x48xf32>
    %430 = vector.extract_strided_slice %429 {offsets = [0, 0], sizes = [8, 16], strides = [1, 1]} : vector<8x48xf32> to vector<8x16xf32>
    %431 = arith.negf %430 : vector<8x16xf32>
    %432 = math.exp %431 : vector<8x16xf32>
    %cst_101 = arith.constant 1.000000e+00 : f32
    %433 = vector.broadcast %cst_101 : f32 to vector<8x16xf32>
    %434 = arith.addf %433, %432 : vector<8x16xf32>
    %435 = arith.divf %433, %434 : vector<8x16xf32>
    %436 = vector.extract_strided_slice %429 {offsets = [0, 16], sizes = [8, 16], strides = [1, 1]} : vector<8x48xf32> to vector<8x16xf32>
    %437 = arith.negf %436 : vector<8x16xf32>
    %438 = math.exp %437 : vector<8x16xf32>
    %cst_102 = arith.constant 1.000000e+00 : f32
    %439 = vector.broadcast %cst_102 : f32 to vector<8x16xf32>
    %440 = arith.addf %439, %438 : vector<8x16xf32>
    %441 = arith.divf %439, %440 : vector<8x16xf32>
    %442 = vector.extract_strided_slice %429 {offsets = [0, 32], sizes = [8, 16], strides = [1, 1]} : vector<8x48xf32> to vector<8x16xf32>
    %443 = arith.mulf %435, %17 : vector<8x16xf32>
    %444 = arith.addf %442, %443 : vector<8x16xf32>
    %445 = math.tanh %444 : vector<8x16xf32>
    %cst_103 = arith.constant 1.000000e+00 : f32
    %446 = vector.broadcast %cst_103 : f32 to vector<8x16xf32>
    %447 = arith.subf %446, %441 : vector<8x16xf32>
    %448 = arith.mulf %447, %445 : vector<8x16xf32>
    %cst_104 = arith.constant dense<0.000000e+00> : vector<8x144xf32>
    %449 = tpu.matmul %448, %20, %cst_104 {dimension_numbers = #tpu.dot_dimension_numbers<[1], [0], [0], [1], [0, 0, 1, 1], [], []>} : vector<8x16xf32>, vector<16x144xf32>, vector<8x144xf32> -> vector<8x144xf32>
    %450 = vector.extract_strided_slice %426 {offsets = [0, 48], sizes = [8, 48], strides = [1, 1]} : vector<8x144xf32> to vector<8x48xf32>
    %451 = arith.addf %450, %12 : vector<8x48xf32>
    %452 = vector.extract_strided_slice %449 {offsets = [0, 48], sizes = [8, 48], strides = [1, 1]} : vector<8x144xf32> to vector<8x48xf32>
    %453 = arith.addf %451, %452 : vector<8x48xf32>
    %454 = arith.addf %453, %425 : vector<8x48xf32>
    %455 = vector.extract_strided_slice %454 {offsets = [0, 0], sizes = [8, 16], strides = [1, 1]} : vector<8x48xf32> to vector<8x16xf32>
    %456 = arith.negf %455 : vector<8x16xf32>
    %457 = math.exp %456 : vector<8x16xf32>
    %cst_105 = arith.constant 1.000000e+00 : f32
    %458 = vector.broadcast %cst_105 : f32 to vector<8x16xf32>
    %459 = arith.addf %458, %457 : vector<8x16xf32>
    %460 = arith.divf %458, %459 : vector<8x16xf32>
    %461 = vector.extract_strided_slice %454 {offsets = [0, 16], sizes = [8, 16], strides = [1, 1]} : vector<8x48xf32> to vector<8x16xf32>
    %462 = arith.negf %461 : vector<8x16xf32>
    %463 = math.exp %462 : vector<8x16xf32>
    %cst_106 = arith.constant 1.000000e+00 : f32
    %464 = vector.broadcast %cst_106 : f32 to vector<8x16xf32>
    %465 = arith.addf %464, %463 : vector<8x16xf32>
    %466 = arith.divf %464, %465 : vector<8x16xf32>
    %467 = vector.extract_strided_slice %454 {offsets = [0, 32], sizes = [8, 16], strides = [1, 1]} : vector<8x48xf32> to vector<8x16xf32>
    %468 = arith.mulf %460, %18 : vector<8x16xf32>
    %469 = arith.addf %467, %468 : vector<8x16xf32>
    %470 = math.tanh %469 : vector<8x16xf32>
    %cst_107 = arith.constant 1.000000e+00 : f32
    %471 = vector.broadcast %cst_107 : f32 to vector<8x16xf32>
    %472 = arith.subf %471, %466 : vector<8x16xf32>
    %473 = arith.mulf %472, %470 : vector<8x16xf32>
    %cst_108 = arith.constant dense<0.000000e+00> : vector<8x96xf32>
    %474 = tpu.matmul %473, %21, %cst_108 {dimension_numbers = #tpu.dot_dimension_numbers<[1], [0], [0], [1], [0, 0, 1, 1], [], []>} : vector<8x16xf32>, vector<16x96xf32>, vector<8x96xf32> -> vector<8x96xf32>
    %475 = vector.extract_strided_slice %426 {offsets = [0, 96], sizes = [8, 48], strides = [1, 1]} : vector<8x144xf32> to vector<8x48xf32>
    %476 = arith.addf %475, %13 : vector<8x48xf32>
    %477 = vector.extract_strided_slice %449 {offsets = [0, 96], sizes = [8, 48], strides = [1, 1]} : vector<8x144xf32> to vector<8x48xf32>
    %478 = arith.addf %476, %477 : vector<8x48xf32>
    %479 = vector.extract_strided_slice %474 {offsets = [0, 48], sizes = [8, 48], strides = [1, 1]} : vector<8x96xf32> to vector<8x48xf32>
    %480 = arith.addf %478, %479 : vector<8x48xf32>
    %481 = arith.addf %480, %421 : vector<8x48xf32>
    %482 = vector.extract_strided_slice %481 {offsets = [0, 0], sizes = [8, 16], strides = [1, 1]} : vector<8x48xf32> to vector<8x16xf32>
    %483 = arith.negf %482 : vector<8x16xf32>
    %484 = math.exp %483 : vector<8x16xf32>
    %cst_109 = arith.constant 1.000000e+00 : f32
    %485 = vector.broadcast %cst_109 : f32 to vector<8x16xf32>
    %486 = arith.addf %485, %484 : vector<8x16xf32>
    %487 = arith.divf %485, %486 : vector<8x16xf32>
    %488 = vector.extract_strided_slice %481 {offsets = [0, 16], sizes = [8, 16], strides = [1, 1]} : vector<8x48xf32> to vector<8x16xf32>
    %489 = arith.negf %488 : vector<8x16xf32>
    %490 = math.exp %489 : vector<8x16xf32>
    %cst_110 = arith.constant 1.000000e+00 : f32
    %491 = vector.broadcast %cst_110 : f32 to vector<8x16xf32>
    %492 = arith.addf %491, %490 : vector<8x16xf32>
    %493 = arith.divf %491, %492 : vector<8x16xf32>
    %494 = vector.extract_strided_slice %481 {offsets = [0, 32], sizes = [8, 16], strides = [1, 1]} : vector<8x48xf32> to vector<8x16xf32>
    %495 = arith.mulf %487, %19 : vector<8x16xf32>
    %496 = arith.addf %494, %495 : vector<8x16xf32>
    %497 = math.tanh %496 : vector<8x16xf32>
    %cst_111 = arith.constant 1.000000e+00 : f32
    %498 = vector.broadcast %cst_111 : f32 to vector<8x16xf32>
    %499 = arith.subf %498, %493 : vector<8x16xf32>
    %500 = arith.mulf %499, %497 : vector<8x16xf32>
    %cst_112 = arith.constant dense<0.000000e+00> : vector<8x48xf32>
    %501 = tpu.matmul %500, %22, %cst_112 {dimension_numbers = #tpu.dot_dimension_numbers<[1], [0], [0], [1], [0, 0, 1, 1], [], []>} : vector<8x16xf32>, vector<16x48xf32>, vector<8x48xf32> -> vector<8x48xf32>
    %502 = tpu.concatenate %448, %473, %500 in 1 : vector<8x16xf32>, vector<8x16xf32>, vector<8x16xf32> -> vector<8x48xf32>
    %c40_113 = arith.constant 40 : index
    %c0_114 = arith.constant 0 : index
    %503 = vector.load %arg14[%c40_113, %c0_114] : memref<64x48xf32, #tpu.memory_space<vmem>>, vector<8x48xf32>
    tpu.vector_store %arg14[%c40_113, %c0_114], %502 {strides = array<i32>} : memref<64x48xf32, #tpu.memory_space<vmem>>, vector<8x48xf32>,
    %504 = vector.extract_strided_slice %449 {offsets = [0, 0], sizes = [8, 48], strides = [1, 1]} : vector<8x144xf32> to vector<8x48xf32>
    %505 = vector.extract_strided_slice %474 {offsets = [0, 0], sizes = [8, 48], strides = [1, 1]} : vector<8x96xf32> to vector<8x48xf32>
    %c48 = arith.constant 48 : index
    %c0_115 = arith.constant 0 : index
    %506 = vector.load %arg13[%c48, %c0_115] : memref<64x144xf32, #tpu.memory_space<vmem>>, vector<8x144xf32>
    %507 = vector.extract_strided_slice %506 {offsets = [0, 0], sizes = [8, 48], strides = [1, 1]} : vector<8x144xf32> to vector<8x48xf32>
    %508 = arith.addf %507, %11 : vector<8x48xf32>
    %509 = arith.addf %508, %504 : vector<8x48xf32>
    %510 = vector.extract_strided_slice %509 {offsets = [0, 0], sizes = [8, 16], strides = [1, 1]} : vector<8x48xf32> to vector<8x16xf32>
    %511 = arith.negf %510 : vector<8x16xf32>
    %512 = math.exp %511 : vector<8x16xf32>
    %cst_116 = arith.constant 1.000000e+00 : f32
    %513 = vector.broadcast %cst_116 : f32 to vector<8x16xf32>
    %514 = arith.addf %513, %512 : vector<8x16xf32>
    %515 = arith.divf %513, %514 : vector<8x16xf32>
    %516 = vector.extract_strided_slice %509 {offsets = [0, 16], sizes = [8, 16], strides = [1, 1]} : vector<8x48xf32> to vector<8x16xf32>
    %517 = arith.negf %516 : vector<8x16xf32>
    %518 = math.exp %517 : vector<8x16xf32>
    %cst_117 = arith.constant 1.000000e+00 : f32
    %519 = vector.broadcast %cst_117 : f32 to vector<8x16xf32>
    %520 = arith.addf %519, %518 : vector<8x16xf32>
    %521 = arith.divf %519, %520 : vector<8x16xf32>
    %522 = vector.extract_strided_slice %509 {offsets = [0, 32], sizes = [8, 16], strides = [1, 1]} : vector<8x48xf32> to vector<8x16xf32>
    %523 = arith.mulf %515, %17 : vector<8x16xf32>
    %524 = arith.addf %522, %523 : vector<8x16xf32>
    %525 = math.tanh %524 : vector<8x16xf32>
    %cst_118 = arith.constant 1.000000e+00 : f32
    %526 = vector.broadcast %cst_118 : f32 to vector<8x16xf32>
    %527 = arith.subf %526, %521 : vector<8x16xf32>
    %528 = arith.mulf %527, %525 : vector<8x16xf32>
    %cst_119 = arith.constant dense<0.000000e+00> : vector<8x144xf32>
    %529 = tpu.matmul %528, %20, %cst_119 {dimension_numbers = #tpu.dot_dimension_numbers<[1], [0], [0], [1], [0, 0, 1, 1], [], []>} : vector<8x16xf32>, vector<16x144xf32>, vector<8x144xf32> -> vector<8x144xf32>
    %530 = vector.extract_strided_slice %506 {offsets = [0, 48], sizes = [8, 48], strides = [1, 1]} : vector<8x144xf32> to vector<8x48xf32>
    %531 = arith.addf %530, %12 : vector<8x48xf32>
    %532 = vector.extract_strided_slice %529 {offsets = [0, 48], sizes = [8, 48], strides = [1, 1]} : vector<8x144xf32> to vector<8x48xf32>
    %533 = arith.addf %531, %532 : vector<8x48xf32>
    %534 = arith.addf %533, %505 : vector<8x48xf32>
    %535 = vector.extract_strided_slice %534 {offsets = [0, 0], sizes = [8, 16], strides = [1, 1]} : vector<8x48xf32> to vector<8x16xf32>
    %536 = arith.negf %535 : vector<8x16xf32>
    %537 = math.exp %536 : vector<8x16xf32>
    %cst_120 = arith.constant 1.000000e+00 : f32
    %538 = vector.broadcast %cst_120 : f32 to vector<8x16xf32>
    %539 = arith.addf %538, %537 : vector<8x16xf32>
    %540 = arith.divf %538, %539 : vector<8x16xf32>
    %541 = vector.extract_strided_slice %534 {offsets = [0, 16], sizes = [8, 16], strides = [1, 1]} : vector<8x48xf32> to vector<8x16xf32>
    %542 = arith.negf %541 : vector<8x16xf32>
    %543 = math.exp %542 : vector<8x16xf32>
    %cst_121 = arith.constant 1.000000e+00 : f32
    %544 = vector.broadcast %cst_121 : f32 to vector<8x16xf32>
    %545 = arith.addf %544, %543 : vector<8x16xf32>
    %546 = arith.divf %544, %545 : vector<8x16xf32>
    %547 = vector.extract_strided_slice %534 {offsets = [0, 32], sizes = [8, 16], strides = [1, 1]} : vector<8x48xf32> to vector<8x16xf32>
    %548 = arith.mulf %540, %18 : vector<8x16xf32>
    %549 = arith.addf %547, %548 : vector<8x16xf32>
    %550 = math.tanh %549 : vector<8x16xf32>
    %cst_122 = arith.constant 1.000000e+00 : f32
    %551 = vector.broadcast %cst_122 : f32 to vector<8x16xf32>
    %552 = arith.subf %551, %546 : vector<8x16xf32>
    %553 = arith.mulf %552, %550 : vector<8x16xf32>
    %cst_123 = arith.constant dense<0.000000e+00> : vector<8x96xf32>
    %554 = tpu.matmul %553, %21, %cst_123 {dimension_numbers = #tpu.dot_dimension_numbers<[1], [0], [0], [1], [0, 0, 1, 1], [], []>} : vector<8x16xf32>, vector<16x96xf32>, vector<8x96xf32> -> vector<8x96xf32>
    %555 = vector.extract_strided_slice %506 {offsets = [0, 96], sizes = [8, 48], strides = [1, 1]} : vector<8x144xf32> to vector<8x48xf32>
    %556 = arith.addf %555, %13 : vector<8x48xf32>
    %557 = vector.extract_strided_slice %529 {offsets = [0, 96], sizes = [8, 48], strides = [1, 1]} : vector<8x144xf32> to vector<8x48xf32>
    %558 = arith.addf %556, %557 : vector<8x48xf32>
    %559 = vector.extract_strided_slice %554 {offsets = [0, 48], sizes = [8, 48], strides = [1, 1]} : vector<8x96xf32> to vector<8x48xf32>
    %560 = arith.addf %558, %559 : vector<8x48xf32>
    %561 = arith.addf %560, %501 : vector<8x48xf32>
    %562 = vector.extract_strided_slice %561 {offsets = [0, 0], sizes = [8, 16], strides = [1, 1]} : vector<8x48xf32> to vector<8x16xf32>
    %563 = arith.negf %562 : vector<8x16xf32>
    %564 = math.exp %563 : vector<8x16xf32>
    %cst_124 = arith.constant 1.000000e+00 : f32
    %565 = vector.broadcast %cst_124 : f32 to vector<8x16xf32>
    %566 = arith.addf %565, %564 : vector<8x16xf32>
    %567 = arith.divf %565, %566 : vector<8x16xf32>
    %568 = vector.extract_strided_slice %561 {offsets = [0, 16], sizes = [8, 16], strides = [1, 1]} : vector<8x48xf32> to vector<8x16xf32>
    %569 = arith.negf %568 : vector<8x16xf32>
    %570 = math.exp %569 : vector<8x16xf32>
    %cst_125 = arith.constant 1.000000e+00 : f32
    %571 = vector.broadcast %cst_125 : f32 to vector<8x16xf32>
    %572 = arith.addf %571, %570 : vector<8x16xf32>
    %573 = arith.divf %571, %572 : vector<8x16xf32>
    %574 = vector.extract_strided_slice %561 {offsets = [0, 32], sizes = [8, 16], strides = [1, 1]} : vector<8x48xf32> to vector<8x16xf32>
    %575 = arith.mulf %567, %19 : vector<8x16xf32>
    %576 = arith.addf %574, %575 : vector<8x16xf32>
    %577 = math.tanh %576 : vector<8x16xf32>
    %cst_126 = arith.constant 1.000000e+00 : f32
    %578 = vector.broadcast %cst_126 : f32 to vector<8x16xf32>
    %579 = arith.subf %578, %573 : vector<8x16xf32>
    %580 = arith.mulf %579, %577 : vector<8x16xf32>
    %cst_127 = arith.constant dense<0.000000e+00> : vector<8x48xf32>
    %581 = tpu.matmul %580, %22, %cst_127 {dimension_numbers = #tpu.dot_dimension_numbers<[1], [0], [0], [1], [0, 0, 1, 1], [], []>} : vector<8x16xf32>, vector<16x48xf32>, vector<8x48xf32> -> vector<8x48xf32>
    %582 = tpu.concatenate %528, %553, %580 in 1 : vector<8x16xf32>, vector<8x16xf32>, vector<8x16xf32> -> vector<8x48xf32>
    %c48_128 = arith.constant 48 : index
    %c0_129 = arith.constant 0 : index
    %583 = vector.load %arg14[%c48_128, %c0_129] : memref<64x48xf32, #tpu.memory_space<vmem>>, vector<8x48xf32>
    tpu.vector_store %arg14[%c48_128, %c0_129], %582 {strides = array<i32>} : memref<64x48xf32, #tpu.memory_space<vmem>>, vector<8x48xf32>,
    %584 = vector.extract_strided_slice %529 {offsets = [0, 0], sizes = [8, 48], strides = [1, 1]} : vector<8x144xf32> to vector<8x48xf32>
    %585 = vector.extract_strided_slice %554 {offsets = [0, 0], sizes = [8, 48], strides = [1, 1]} : vector<8x96xf32> to vector<8x48xf32>
    %c56 = arith.constant 56 : index
    %c0_130 = arith.constant 0 : index
    %586 = vector.load %arg13[%c56, %c0_130] : memref<64x144xf32, #tpu.memory_space<vmem>>, vector<8x144xf32>
    %587 = vector.extract_strided_slice %586 {offsets = [0, 0], sizes = [8, 48], strides = [1, 1]} : vector<8x144xf32> to vector<8x48xf32>
    %588 = arith.addf %587, %11 : vector<8x48xf32>
    %589 = arith.addf %588, %584 : vector<8x48xf32>
    %590 = vector.extract_strided_slice %589 {offsets = [0, 0], sizes = [8, 16], strides = [1, 1]} : vector<8x48xf32> to vector<8x16xf32>
    %591 = arith.negf %590 : vector<8x16xf32>
    %592 = math.exp %591 : vector<8x16xf32>
    %cst_131 = arith.constant 1.000000e+00 : f32
    %593 = vector.broadcast %cst_131 : f32 to vector<8x16xf32>
    %594 = arith.addf %593, %592 : vector<8x16xf32>
    %595 = arith.divf %593, %594 : vector<8x16xf32>
    %596 = vector.extract_strided_slice %589 {offsets = [0, 16], sizes = [8, 16], strides = [1, 1]} : vector<8x48xf32> to vector<8x16xf32>
    %597 = arith.negf %596 : vector<8x16xf32>
    %598 = math.exp %597 : vector<8x16xf32>
    %cst_132 = arith.constant 1.000000e+00 : f32
    %599 = vector.broadcast %cst_132 : f32 to vector<8x16xf32>
    %600 = arith.addf %599, %598 : vector<8x16xf32>
    %601 = arith.divf %599, %600 : vector<8x16xf32>
    %602 = vector.extract_strided_slice %589 {offsets = [0, 32], sizes = [8, 16], strides = [1, 1]} : vector<8x48xf32> to vector<8x16xf32>
    %603 = arith.mulf %595, %17 : vector<8x16xf32>
    %604 = arith.addf %602, %603 : vector<8x16xf32>
    %605 = math.tanh %604 : vector<8x16xf32>
    %cst_133 = arith.constant 1.000000e+00 : f32
    %606 = vector.broadcast %cst_133 : f32 to vector<8x16xf32>
    %607 = arith.subf %606, %601 : vector<8x16xf32>
    %608 = arith.mulf %607, %605 : vector<8x16xf32>
    %cst_134 = arith.constant dense<0.000000e+00> : vector<8x144xf32>
    %609 = tpu.matmul %608, %20, %cst_134 {dimension_numbers = #tpu.dot_dimension_numbers<[1], [0], [0], [1], [0, 0, 1, 1], [], []>} : vector<8x16xf32>, vector<16x144xf32>, vector<8x144xf32> -> vector<8x144xf32>
    %610 = vector.extract_strided_slice %586 {offsets = [0, 48], sizes = [8, 48], strides = [1, 1]} : vector<8x144xf32> to vector<8x48xf32>
    %611 = arith.addf %610, %12 : vector<8x48xf32>
    %612 = vector.extract_strided_slice %609 {offsets = [0, 48], sizes = [8, 48], strides = [1, 1]} : vector<8x144xf32> to vector<8x48xf32>
    %613 = arith.addf %611, %612 : vector<8x48xf32>
    %614 = arith.addf %613, %585 : vector<8x48xf32>
    %615 = vector.extract_strided_slice %614 {offsets = [0, 0], sizes = [8, 16], strides = [1, 1]} : vector<8x48xf32> to vector<8x16xf32>
    %616 = arith.negf %615 : vector<8x16xf32>
    %617 = math.exp %616 : vector<8x16xf32>
    %cst_135 = arith.constant 1.000000e+00 : f32
    %618 = vector.broadcast %cst_135 : f32 to vector<8x16xf32>
    %619 = arith.addf %618, %617 : vector<8x16xf32>
    %620 = arith.divf %618, %619 : vector<8x16xf32>
    %621 = vector.extract_strided_slice %614 {offsets = [0, 16], sizes = [8, 16], strides = [1, 1]} : vector<8x48xf32> to vector<8x16xf32>
    %622 = arith.negf %621 : vector<8x16xf32>
    %623 = math.exp %622 : vector<8x16xf32>
    %cst_136 = arith.constant 1.000000e+00 : f32
    %624 = vector.broadcast %cst_136 : f32 to vector<8x16xf32>
    %625 = arith.addf %624, %623 : vector<8x16xf32>
    %626 = arith.divf %624, %625 : vector<8x16xf32>
    %627 = vector.extract_strided_slice %614 {offsets = [0, 32], sizes = [8, 16], strides = [1, 1]} : vector<8x48xf32> to vector<8x16xf32>
    %628 = arith.mulf %620, %18 : vector<8x16xf32>
    %629 = arith.addf %627, %628 : vector<8x16xf32>
    %630 = math.tanh %629 : vector<8x16xf32>
    %cst_137 = arith.constant 1.000000e+00 : f32
    %631 = vector.broadcast %cst_137 : f32 to vector<8x16xf32>
    %632 = arith.subf %631, %626 : vector<8x16xf32>
    %633 = arith.mulf %632, %630 : vector<8x16xf32>
    %cst_138 = arith.constant dense<0.000000e+00> : vector<8x96xf32>
    %634 = tpu.matmul %633, %21, %cst_138 {dimension_numbers = #tpu.dot_dimension_numbers<[1], [0], [0], [1], [0, 0, 1, 1], [], []>} : vector<8x16xf32>, vector<16x96xf32>, vector<8x96xf32> -> vector<8x96xf32>
    %635 = vector.extract_strided_slice %586 {offsets = [0, 96], sizes = [8, 48], strides = [1, 1]} : vector<8x144xf32> to vector<8x48xf32>
    %636 = arith.addf %635, %13 : vector<8x48xf32>
    %637 = vector.extract_strided_slice %609 {offsets = [0, 96], sizes = [8, 48], strides = [1, 1]} : vector<8x144xf32> to vector<8x48xf32>
    %638 = arith.addf %636, %637 : vector<8x48xf32>
    %639 = vector.extract_strided_slice %634 {offsets = [0, 48], sizes = [8, 48], strides = [1, 1]} : vector<8x96xf32> to vector<8x48xf32>
    %640 = arith.addf %638, %639 : vector<8x48xf32>
    %641 = arith.addf %640, %581 : vector<8x48xf32>
    %642 = vector.extract_strided_slice %641 {offsets = [0, 0], sizes = [8, 16], strides = [1, 1]} : vector<8x48xf32> to vector<8x16xf32>
    %643 = arith.negf %642 : vector<8x16xf32>
    %644 = math.exp %643 : vector<8x16xf32>
    %cst_139 = arith.constant 1.000000e+00 : f32
    %645 = vector.broadcast %cst_139 : f32 to vector<8x16xf32>
    %646 = arith.addf %645, %644 : vector<8x16xf32>
    %647 = arith.divf %645, %646 : vector<8x16xf32>
    %648 = vector.extract_strided_slice %641 {offsets = [0, 16], sizes = [8, 16], strides = [1, 1]} : vector<8x48xf32> to vector<8x16xf32>
    %649 = arith.negf %648 : vector<8x16xf32>
    %650 = math.exp %649 : vector<8x16xf32>
    %cst_140 = arith.constant 1.000000e+00 : f32
    %651 = vector.broadcast %cst_140 : f32 to vector<8x16xf32>
    %652 = arith.addf %651, %650 : vector<8x16xf32>
    %653 = arith.divf %651, %652 : vector<8x16xf32>
    %654 = vector.extract_strided_slice %641 {offsets = [0, 32], sizes = [8, 16], strides = [1, 1]} : vector<8x48xf32> to vector<8x16xf32>
    %655 = arith.mulf %647, %19 : vector<8x16xf32>
    %656 = arith.addf %654, %655 : vector<8x16xf32>
    %657 = math.tanh %656 : vector<8x16xf32>
    %cst_141 = arith.constant 1.000000e+00 : f32
    %658 = vector.broadcast %cst_141 : f32 to vector<8x16xf32>
    %659 = arith.subf %658, %653 : vector<8x16xf32>
    %660 = arith.mulf %659, %657 : vector<8x16xf32>
    %661 = tpu.concatenate %608, %633, %660 in 1 : vector<8x16xf32>, vector<8x16xf32>, vector<8x16xf32> -> vector<8x48xf32>
    %c56_142 = arith.constant 56 : index
    %c0_143 = arith.constant 0 : index
    %662 = vector.load %arg14[%c56_142, %c0_143] : memref<64x48xf32, #tpu.memory_space<vmem>>, vector<8x48xf32>
    tpu.vector_store %arg14[%c56_142, %c0_143], %661 {strides = array<i32>} : memref<64x48xf32, #tpu.memory_space<vmem>>, vector<8x48xf32>,
    %c0_144 = arith.constant 0 : index
    %c0_145 = arith.constant 0 : index
    %663 = vector.load %arg10[%c0_144, %c0_145] : memref<6x48xf32, #tpu.memory_space<vmem>>, vector<6x48xf32>
    %c0_146 = arith.constant 0 : index
    %c0_147 = arith.constant 0 : index
    %664 = vector.load %arg14[%c0_146, %c0_147] : memref<64x48xf32, #tpu.memory_space<vmem>>, vector<64x48xf32>
    %cst_148 = arith.constant dense<0.000000e+00> : vector<6x64xf32>
    %665 = tpu.matmul %663, %664, %cst_148 {dimension_numbers = #tpu.dot_dimension_numbers<[1], [1], [0], [0], [0, 0, 1, 0], [], []>} : vector<6x48xf32>, vector<64x48xf32>, vector<6x64xf32> -> vector<6x64xf32>
    %c0_149 = arith.constant 0 : index
    %c0_150 = arith.constant 0 : index
    %666 = vector.load %arg11[%c0_149, %c0_150] : memref<6x1xf32, #tpu.memory_space<vmem>>, vector<6x1xf32>
    %667 = vector.broadcast %666 : vector<6x1xf32> to vector<6x64xf32>
    %668 = arith.addf %665, %667 : vector<6x64xf32>
    %c0_151 = arith.constant 0 : index
    %c0_152 = arith.constant 0 : index
    %669 = vector.load %arg12[%c0_151, %c0_152] : memref<6x64xf32, #tpu.memory_space<vmem>>, vector<6x64xf32>
    tpu.vector_store %arg12[%c0_151, %c0_152], %668 {strides = array<i32>} : memref<6x64xf32, #tpu.memory_space<vmem>>, vector<6x64xf32>,
    return
  }
  func.func @transform_0(%arg0: i32) -> (i32, i32, i32) {
    %c0_i32 = arith.constant 0 : i32
    %c0_i32_0 = arith.constant 0 : i32
    %c0_i32_1 = arith.constant 0 : i32
    return %arg0, %c0_i32, %c0_i32_0 : i32, i32, i32
  }
  func.func @transform_1(%arg0: i32) -> (i32, i32) {
    %c0_i32 = arith.constant 0 : i32
    %c0_i32_0 = arith.constant 0 : i32
    return %arg0, %c0_i32 : i32, i32
  }
  func.func @transform_2(%arg0: i32) -> (i32, i32) {
    %c0_i32 = arith.constant 0 : i32
    %c0_i32_0 = arith.constant 0 : i32
    %c0_i32_1 = arith.constant 0 : i32
    return %c0_i32, %c0_i32_0 : i32, i32
  }
  func.func @transform_3(%arg0: i32) -> (i32, i32) {
    %c0_i32 = arith.constant 0 : i32
    %c0_i32_0 = arith.constant 0 : i32
    %c0_i32_1 = arith.constant 0 : i32
    return %c0_i32, %c0_i32_0 : i32, i32
  }
  func.func @transform_4(%arg0: i32) -> (i32, i32) {
    %c0_i32 = arith.constant 0 : i32
    %c0_i32_0 = arith.constant 0 : i32
    %c0_i32_1 = arith.constant 0 : i32
    return %c0_i32, %c0_i32_0 : i32, i32
  }
  func.func @transform_5(%arg0: i32) -> (i32, i32) {
    %c0_i32 = arith.constant 0 : i32
    %c0_i32_0 = arith.constant 0 : i32
    %c0_i32_1 = arith.constant 0 : i32
    return %c0_i32, %c0_i32_0 : i32, i32
  }
  func.func @transform_6(%arg0: i32) -> (i32, i32) {
    %c0_i32 = arith.constant 0 : i32
    %c0_i32_0 = arith.constant 0 : i32
    %c0_i32_1 = arith.constant 0 : i32
    return %c0_i32, %c0_i32_0 : i32, i32
  }
  func.func @transform_7(%arg0: i32) -> (i32, i32) {
    %c0_i32 = arith.constant 0 : i32
    %c0_i32_0 = arith.constant 0 : i32
    %c0_i32_1 = arith.constant 0 : i32
    return %c0_i32, %c0_i32_0 : i32, i32
  }
  func.func @transform_8(%arg0: i32) -> (i32, i32) {
    %c0_i32 = arith.constant 0 : i32
    %c0_i32_0 = arith.constant 0 : i32
    %c0_i32_1 = arith.constant 0 : i32
    return %c0_i32, %c0_i32_0 : i32, i32
  }
  func.func @transform_9(%arg0: i32) -> (i32, i32) {
    %c0_i32 = arith.constant 0 : i32
    %c0_i32_0 = arith.constant 0 : i32
    %c0_i32_1 = arith.constant 0 : i32
    return %c0_i32, %c0_i32_0 : i32, i32
  }
  func.func @transform_10(%arg0: i32) -> (i32, i32) {
    %c0_i32 = arith.constant 0 : i32
    %c0_i32_0 = arith.constant 0 : i32
    %c0_i32_1 = arith.constant 0 : i32
    return %c0_i32, %c0_i32_0 : i32, i32
  }
  func.func @transform_11(%arg0: i32) -> (i32, i32) {
    %c0_i32 = arith.constant 0 : i32
    %c0_i32_0 = arith.constant 0 : i32
    return %c0_i32, %arg0 : i32, i32
  }
}

</mosaic_0001>

<bundles_post_ra>
// kernel: multi_task_forward.1
= control target key start
LH: loop header
LB: loop body
LE: loop exit
PB: predicated region body
PF: predicated region fallthrough
CT: control target
= control target key end

     0   :  { %vm75_vm0 = vcmask 1043456   ;;  %v3294_v3 = vmov 0.0   ;;  %vm50_vm1 = vcmask 97280   ;;  %vm235_vm2 = vcmask 1041408   ;;  %s3295_s15 = smov 32   ;;  %s3296_s24 = smov 112   ;;  %s4016_s2 = inlined_call_operand.vmem [shape: f32[12,144], index: 2, kind: input, shape index: {}]   ;;  %s4017_s0 = inlined_call_operand.vmem [shape: f32[1,64,12], index: 0, kind: input, shape index: {}]   ;;  %s4018_s3 = inlined_call_operand.vmem [shape: f32[18,144], index: 3, kind: input, shape index: {}]   ;;  %s4019_s1 = inlined_call_operand.vmem [shape: f32[8,18], index: 1, kind: input, shape index: {}]   ;;  %s4020_s4 = inlined_call_operand.vmem [shape: f32[1,144], index: 4, kind: input, shape index: {}]   ;;  %s4021_s8 = inlined_call_operand.vmem [shape: f32[1,48], index: 8, kind: input, shape index: {}]   ;;  %s4022_s5 = inlined_call_operand.vmem [shape: f32[16,144], index: 5, kind: input, shape index: {}]   ;;  %s4023_s6 = inlined_call_operand.vmem [shape: f32[16,96], index: 6, kind: input, shape index: {}]   ;;  %s4024_s7 = inlined_call_operand.vmem [shape: f32[16,48], index: 7, kind: input, shape index: {}]   ;;  %s4025_s10 = inlined_call_operand.vmem [shape: f32[6,1], index: 10, kind: input, shape index: {}]   ;;  %s4026_s9 = inlined_call_operand.vmem [shape: f32[6,48], index: 9, kind: input, shape index: {}]   ;;  %s4027_s11 = inlined_call_operand.vmem [shape: f32[6,64], index: 11, kind: output, shape index: {}]  }
   0x1   :  { %v49_v0 = vld [vmem:[%s4016_s2 + $0x18] sm:$0xf]  ;;  %v48_v1 = vld [vmem:[%s4016_s2 + $0x10] sm:$0xf]  ;;  %v47_v2 = vld [vmem:[%s4016_s2 + $0x8] sm:$0xff]  ;;  %146 = vmatprep.mubr.f32.mxu0 %v3294_v3  ;;  %170 = vmatprep.mubr.f32.mxu1 %v3294_v3  ;;  %vm231_vm3 = vcmask 146432   ;;  %v221_v20 = vlaneseq }
   0x2   :  { %2880 = vmatprep.subr.msk.mxu0 %vm75_vm0, %v49_v0  ;;  %3128 = vmatprep.subr.msk.mxu1 %vm75_vm0, %v49_v0  ;;  %v46_v4 = vld [vmem:[%s4016_s2] sm:$0xff]  ;;  %v218_v7 = vld [vmem:[%s4018_s3 + $0x28] sm:$0x3]  ;;  %v216_v9 = vld [vmem:[%s4018_s3 + $0x18] sm:$0xff]  ;;  %vm196_vm4 = vcmask 130048   ;;  %vm3297_vm5 = vmmov 0  }
   0x3   :  { %2881 = vmatpush1.msk.msra.mxu0 %vm75_vm0, %v48_v1  ;;  %3130 = vmatpush1.msk.msra.mxu1 %vm75_vm0, %v48_v1  ;;  %v38_v5 = vld [vmem:[%s4017_s0] sm:$0xff]  ;;  %v39_v10 = vld [vmem:[%s4017_s0 + $0x8] sm:$0xff]  ;;  %v215_v12 = vld [vmem:[%s4018_s3 + $0x10] sm:$0xff]  ;;  %v222_v21 = vshrl.u32 %v221_v20, 7  ;;  %s3298_s29 = smov 64   ;;  %s3299_s30 = smov 48  }
   0x4   :  { %v42_v6 = vld [vmem:[%s4017_s0 + $0x20] sm:$0xff]  ;;  %112 = vmatprep.subr.mxu0 %v47_v2  ;;  %3129 = vmatprep.subr.mxu1 %v47_v2  ;;  %v43_v11 = vld [vmem:[%s4017_s0 + $0x28] sm:$0xff]  ;;  %v40_v14 = vld [vmem:[%s4017_s0 + $0x10] sm:$0xff]  ;;  %s3300_s14 = smov 16   ;;  %vm641_vm6 = vcmask 261120   ;;  %vm643_vm7 = vcmask 392192  }
   0x5   :  { %113 = vmatpush1.msra.mxu0 %v46_v4  ;;  %3131 = vmatpush1.msra.mxu1 %v46_v4  ;;  %v217_v8 = vld [vmem:[%s4018_s3 + $0x20] sm:$0x3]  ;;  %v214_v13 = vld [vmem:[%s4018_s3 + $0x8] sm:$0xff]  ;;  %v44_v15 = vld [vmem:[%s4017_s0 + $0x30] sm:$0xff]  ;;  %v227_v22 = vsub.s32 1, %v222_v21  ;;  %v223_v35 = vsub.s32 0, %v222_v21 }
   0x6   :  { %2882 = vmatmul.mubr.msk.f32.vlgmr.msra.gmra.mxu0 %vm50_vm1, %v38_v5  ;;  %2886 = vmatmul.mubr.msk.f32.vlgmr.msra.gmra.mxu1 %vm50_vm1, %v42_v6  ;;  %v213_v16 = vld [vmem:[%s4018_s3] sm:$0xff]  ;;  %v41_v17 = vld [vmem:[%s4017_s0 + $0x18] sm:$0xff]  ;;  %v3489_v61 = vld [vmem:[%s4022_s5 + $0x10] sm:$0xff]  ;;  %vm2874_vm8 = vcmask 521216  }
   0x7   :  { %2890 = vmatprep.subr.msk.mxu1 %vm235_vm2, %v218_v7  ;;  %152 = vmatprep.mubr.f32.mxu0 %v3294_v3  ;;  %v45_v18 = vld [vmem:[%s4017_s0 + $0x38] sm:$0xff]  ;;  %v212_v19 = vld [vmem:[%s4019_s1] sm:$0xff]  ;;  %v3494_v62 = vld [vmem:[%s4022_s5 + $0x8] sm:$0xff] }
   0x8   :  { %2891 = vmatpush1.msk.msra.mxu1 %vm235_vm2, %v217_v8  ;;  %176 = vmatprep.mubr.f32.mxu1 %v3294_v3  ;;  %v219_v23 = vld [vmem:[%s4020_s4] sm:$0x3]  ;;  %v3484_v60 = vld [vmem:[%s4022_s5 + $0x18] sm:$0xff] }
   0x9   :  { %270 = vmatprep.subr.mxu1 %v216_v9  ;;  %3032 = vmatprep.subr.mxu0 %v3294_v3  ;;  %v3443_v24 = vrot.slane %v219_v23, %v227_v22  ;;  %v224_v40 = vrot.slane %v219_v23, %v223_v35  ;;  %v3477_v55 = vld [vmem:[%s4021_s8] ss:$0 sm:$0xff] }
   0xa   :  { %2883 = vmatmul.mubr.msk.f32.gmra.mxu0 %vm50_vm1, %v39_v10  ;;  %2887 = vmatmul.mubr.msk.f32.gmra.mxu1 %vm50_vm1, %v43_v11  ;;  %v3500_v63 = vld [vmem:[%s4022_s5] sm:$0xff] }
   0xb   :  { %158 = vmatprep.mubr.f32.mxu0 %v3294_v3  ;;  %182 = vmatprep.mubr.f32.mxu1 %v3294_v3 }
   0xc   :  { %271 = vmatpush1.msra.mxu1 %v215_v12 }
   0xd   :  { %272 = vmatprep.subr.mxu1 %v214_v13 }
   0xe   :  { %2884 = vmatmul.mubr.msk.f32.gmra.mxu0 %vm50_vm1, %v40_v14  ;;  %2888 = vmatmul.mubr.msk.f32.gmra.mxu1 %vm50_vm1, %v44_v15 }
   0xf   :  { %164 = vmatprep.mubr.f32.mxu0 %v3294_v3  ;;  %188 = vmatprep.mubr.f32.mxu1 %v3294_v3 }
  0x10   :  { %273 = vmatpush1.msra.mxu1 %v213_v16 }
  0x11   :  { %384 = vmatprep.subr.mxu1 %v3484_v60 }
  0x12   :  { %2885 = vmatmul.mubr.msk.f32.gmra.mxu0 %vm50_vm1, %v41_v17  ;;  %2889 = vmatmul.mubr.msk.f32.gmra.mxu1 %vm50_vm1, %v45_v18  ;;  %v3527_v17 = vld [vmem:[%s4023_s6 + $0x8] sm:$0xff]  ;;  %v3532_v18 = vld [vmem:[%s4023_s6] sm:$0xff] }
  0x13   :  { %306 = vmatprep.mubr.f32.mxu1 %v3294_v3  ;;  %3036 = vmatprep.mubr.msk.f32.mxu0 %vm3297_vm5, %v3294_v3 }
  0x14   :  { %3033 = vmatpush3.msra.mxu0 %v3527_v17 }
  0x15   :  { %3034 = vmatprep.subr.mxu0 %v3294_v3 }
  0x16   :  { %2892 = vmatmul.mubr.msk.f32.vlgmr.msra.gmra.mxu1 %vm231_vm3, %v212_v19  ;;  %3035 = vmatpush3.msra.mxu0 %v3532_v18 }
  0x17   :  { %420 = vmatprep.mubr.f32.mxu1 %v3294_v3  ;;  %385 = vmatpush1.msra.mxu1 %v3489_v61 }
  0x18   :  { %386 = vmatprep.subr.mxu1 %v3494_v62  ;;  %1327 = vmatprep.subr.mxu0 %v3484_v60 }
  0x19   :  { %387 = vmatpush1.msra.mxu1 %v3500_v63 }
  0x1a   :  { %3004 = vmatprep.subr.mxu1 %v3294_v3 }
  0xc6   :  { %v148_v25 = vpop.f32.mrf.mxu0  ;;  %v172_v26 = vpop.f32.mrf.mxu1 }
  0xc8   :  { %v150_v27 = vpop.f32.mrf.mxu0  ;;  %v174_v28 = vpop.f32.mrf.mxu1 }
  0xc9   :  { %197 = vst.msk [vmem:[#allocation2 + $0x8] sm:$0xff] %vm196_vm4, %v150_v27  ;;  %205 = vst.msk [vmem:[#allocation2 + $0x48] sm:$0xff] %vm196_vm4, %v174_v28 }
  0xca   :  { %v154_v29 = vpop.f32.mrf.mxu0  ;;  %v178_v30 = vpop.f32.mrf.mxu1 }
  0xcc   :  { %v156_v31 = vpop.f32.mrf.mxu0  ;;  %v180_v32 = vpop.f32.mrf.mxu1 }
  0xcd   :  { %199 = vst.msk [vmem:[#allocation2 + $0x18] sm:$0xff] %vm196_vm4, %v156_v31  ;;  %207 = vst.msk [vmem:[#allocation2 + $0x58] sm:$0xff] %vm196_vm4, %v180_v32 }
  0xce   :  { %v160_v33 = vpop.f32.mrf.mxu0  ;;  %v184_v34 = vpop.f32.mrf.mxu1 }
  0xd0   :  { %v162_v36 = vpop.f32.mrf.mxu0  ;;  %v186_v37 = vpop.f32.mrf.mxu1 }
  0xd1   :  { %201 = vst.msk [vmem:[#allocation2 + $0x28] sm:$0xff] %vm196_vm4, %v162_v36  ;;  %209 = vst.msk [vmem:[#allocation2 + $0x68] sm:$0xff] %vm196_vm4, %v186_v37 }
  0xd2   :  { %v166_v38 = vpop.f32.mrf.mxu0  ;;  %v190_v39 = vpop.f32.mrf.mxu1 }
  0xd3   :  { %210 = vst [vmem:[#allocation2 + $0x70] sm:$0xff] %v190_v39 }
  0xd4   :  { %v168_v41 = vpop.f32.mrf.mxu0  ;;  %v192_v42 = vpop.f32.mrf.mxu1 }
  0xd5   :  { %203 = vst.msk [vmem:[#allocation2 + $0x38] sm:$0xff] %vm196_vm4, %v168_v41  ;;  %211 = vst.msk [vmem:[#allocation2 + $0x78] sm:$0xff] %vm196_vm4, %v192_v42 }
  0xd6   :  { %v308_v43 = vpop.f32.mrf.mxu1 }
  0xd7   :  { %v3453_v44 = vadd.f32 %v308_v43, %v224_v40 }
  0xd8   :  { %v3514_v6 = vpop.f32.mrf.mxu1 }
  0xd9   :  { %v330_v45 = vadd.f32 %v3453_v44, %v148_v25  ;;  %v3457_v46 = vadd.f32 %v3453_v44, %v154_v29  ;;  %v3460_v47 = vadd.f32 %v3453_v44, %v160_v33  ;;  %v3463_v48 = vadd.f32 %v3453_v44, %v166_v38 }
  0xda   :  { %v3466_v49 = vadd.f32 %v3453_v44, %v172_v26  ;;  %v3469_v50 = vadd.f32 %v3453_v44, %v178_v30  ;;  %v3472_v51 = vadd.f32 %v3453_v44, %v184_v34 }
  0xdb   :  { %v2894_v52 = vmul.f32 -1.442695, %v330_v45 }
  0xdd   :  { %3143 = vpow2.f32 %v2894_v52 }
  0xea   :  { %v3144_v53 = vpop.eup %3143 }
  0xeb   :  { %v335_v54 = vadd.f32 1.0, %v3144_v53 }
  0xed   :  { %3145 = vrcp.f32 %v335_v54 }
  0xfa   :  { %v3146_v56 = vpop.eup %3145 }
  0xfb   :  { %v338_v57 = vmul.f32 %v3146_v56, %v3477_v55  ;;  %v345_v1 = vsub.f32 1.0, %v3146_v56  ;;  %v3569_v56 = vadd.f32 %v3514_v6, %v3443_v24 }
  0xfd   :  { %340 = vrot.lane.b32.xlu0 %v338_v57, %s3295_s15  ;;  %v329_v57 = vld [vmem:[#allocation2 + $0x8] sm:$0xff] }
 0x16f   :  { %v341_v58 = vpop.permute.xlu0 %340 }
 0x170   :  { %v343_v59 = vadd.f32 %v341_v58, %v330_v45  ;;  %v526_v58 = vadd.f32 %v329_v57, %v3569_v56 }
 0x172   :  { %3147 = vtanh.f32 %v343_v59 }
 0x17f   :  { %v3148_v0 = vpop.eup %3147 }
 0x180   :  { %347 = vrot.lane.b32.xlu0 %v3148_v0, %s3296_s24 }
 0x1f2   :  { %v348_v2 = vpop.permute.xlu0 %347 }
 0x1f3   :  { %v350_v4 = vmul.f32 %v348_v2, %v345_v1 }
 0x1f5   :  { %352 = vrot.lane.b32.xlu1 %v350_v4, %s3296_s24  ;;  %v3575_v4 = vld [vmem:[%s4024_s7 + $0x8] sm:$0xff] }
 0x1f9   :  { %435 = vrot.lane.b32.xlu1 %v3477_v55, %s3295_s15 }
 0x267   :  { %v3510_v5 = vpop.permute.xlu1 %352 }
 0x268   :  { %2895 = vmatmul.mubr.msk.f32.vlgmr.msra.gmra.mxu1 %vm196_vm4, %v3510_v5 }
 0x269   :  { %3008 = vmatprep.mubr.msk.f32.mxu1 %vm3297_vm5, %v3294_v3  ;;  %3005 = vmatpush3.msra.mxu1 %v3527_v17 }
 0x26a   :  { %3006 = vmatprep.subr.mxu1 %v3294_v3 }
 0x26b   :  { %v3519_v12 = vpop.permute.xlu1 %435  ;;  %3007 = vmatpush3.msra.mxu1 %v3532_v18 }
 0x26c   :  { %3011 = vmatprep.subr.mxu1 %v3294_v3 }
 0x328   :  { %v422_v7 = vpop.f32.mrf.mxu1 }
 0x329   :  { %v3516_v8 = vadd.f32 %v422_v7, %v330_v45  ;;  %v648_v20 = vadd.f32 %v3457_v46, %v422_v7  ;;  %v3580_v7 = vld [vmem:[%s4024_s7] sm:$0xff]  ;;  %s3301_s7 = smov 96  }
 0x32a   :  { %v424_v38 = vpop.f32.mrf.mxu1 }
 0x32b   :  { %v2896_v9 = vmul.f32 -1.442695, %v3516_v8  ;;  %v2900_v21 = vmul.f32 -1.442695, %v648_v20  ;;  %v527_v59 = vadd.f32 %v526_v58, %v424_v38 }
 0x32d   :  { %3149 = vpow2.f32 %v2896_v9 }
 0x33a   :  { %v3150_v10 = vpop.eup %3149 }
 0x33b   :  { %v432_v11 = vadd.f32 1.0, %v3150_v10 }
 0x33d   :  { %3151 = vrcp.f32 %v432_v11 }
 0x34a   :  { %v3152_v13 = vpop.eup %3151 }
 0x34b   :  { %v438_v14 = vmul.f32 %v3152_v13, %v3519_v12  ;;  %v445_v25 = vsub.f32 1.0, %v3152_v13 }
 0x34d   :  { %440 = vrot.lane.b32.xlu0 %v438_v14, %s3295_s15 }
 0x3bf   :  { %v441_v15 = vpop.permute.xlu0 %440 }
 0x3c0   :  { %v443_v16 = vadd.f32 %v441_v15, %v3516_v8 }
 0x3c2   :  { %3153 = vtanh.f32 %v443_v16 }
 0x3c3   :  { %3155 = vpow2.f32 %v2900_v21 }
 0x3cf   :  { %v3154_v19 = vpop.eup %3153 }
 0x3d0   :  { %447 = vrot.lane.b32.xlu1 %v3154_v19, %s3296_s24  ;;  %v3156_v22 = vpop.eup %3155 }
 0x3d1   :  { %v652_v23 = vadd.f32 1.0, %v3156_v22 }
 0x3d3   :  { %3157 = vrcp.f32 %v652_v23 }
 0x3e0   :  { %v3158_v28 = vpop.eup %3157 }
 0x3e1   :  { %v655_v29 = vmul.f32 %v3158_v28, %v3477_v55  ;;  %v662_v35 = vsub.f32 1.0, %v3158_v28 }
 0x442   :  { %v448_v26 = vpop.permute.xlu1 %447 }
 0x443   :  { %v3548_v27 = vmul.f32 %v448_v26, %v445_v25 }
 0x445   :  { %452 = vrot.lane.b32.xlu0 %v3548_v27, %s3298_s29 }
 0x449   :  { %542 = vrot.lane.b32.xlu0 %v3477_v55, %s3298_s29 }
 0x44d   :  { %657 = vrot.lane.b32.xlu0 %v655_v29, %s3295_s15 }
 0x4b7   :  { %v453_v30 = vpop.permute.xlu0 %452 }
 0x4b8   :  { %3009 = vmatmul.mubr.msk.f32.vlgmr.msra.gmra.mxu1 %vm196_vm4, %v453_v30 }
 0x4b9   :  { %3015 = vmatprep.mubr.msk.f32.mxu1 %vm3297_vm5, %v3294_v3  ;;  %3012 = vmatpush3.msra.mxu1 %v3575_v4 }
 0x4ba   :  { %3013 = vmatprep.subr.mxu1 %v3294_v3 }
 0x4bb   :  { %v3559_v31 = vpop.permute.xlu0 %542  ;;  %3014 = vmatpush3.msra.mxu1 %v3580_v7 }
 0x4bc   :  { %701 = vmatprep.subr.mxu1 %v3484_v60 }
 0x4bf   :  { %v658_v32 = vpop.permute.xlu0 %657 }
 0x4c0   :  { %v660_v33 = vadd.f32 %v658_v32, %v648_v20 }
 0x4c2   :  { %3159 = vtanh.f32 %v660_v33 }
 0x4cf   :  { %v3160_v34 = vpop.eup %3159 }
 0x4d0   :  { %664 = vrot.lane.b32.xlu0 %v3160_v34, %s3296_s24 }
 0x542   :  { %v665_v36 = vpop.permute.xlu0 %664 }
 0x543   :  { %v667_v37 = vmul.f32 %v665_v36, %v662_v35 }
 0x545   :  { %669 = vrot.lane.b32.xlu0 %v667_v37, %s3296_s24 }
 0x578   :  { %v522_v39 = vpop.f32.mrf.mxu1 }
 0x579   :  { %529 = vrot.lane.b32.xlu1 %v522_v39, %s3299_s30 }
 0x57a   :  { %v3010_v40 = vpop.f32.mrf.mxu1 }
 0x5b7   :  { %v3595_v11 = vpop.permute.xlu0 %669 }
 0x5eb   :  { %v530_v41 = vpop.permute.xlu1 %529 }
 0x5ec   :  { %v532_v42 = vadd.f32 %v530_v41, %v3516_v8  ;;  %v533_v0 = vadd.f32 %v530_v41, %v527_v59 }
 0x5ee   :  { %v2898_v43 = vmul.f32 -1.442695, %v532_v42 }
 0x5f0   :  { %3161 = vpow2.f32 %v2898_v43 }
 0x5fd   :  { %v3162_v45 = vpop.eup %3161 }
 0x5fe   :  { %v539_v52 = vadd.f32 1.0, %v3162_v45 }
 0x600   :  { %3163 = vrcp.f32 %v539_v52 }
 0x60d   :  { %v3164_v53 = vpop.eup %3163 }
 0x60e   :  { %v545_v54 = vmul.f32 %v3164_v53, %v3559_v31  ;;  %v552_v6 = vsub.f32 1.0, %v3164_v53 }
 0x610   :  { %547 = vrot.lane.b32.xlu1 %v545_v54, %s3295_s15 }
 0x682   :  { %v548_v1 = vpop.permute.xlu1 %547 }
 0x683   :  { %v550_v2 = vadd.f32 %v548_v1, %v533_v0 }
 0x685   :  { %3165 = vtanh.f32 %v550_v2 }
 0x692   :  { %v3166_v24 = vpop.eup %3165 }
 0x693   :  { %554 = vrot.lane.b32.xlu1 %v3166_v24, %s3296_s24 }
 0x705   :  { %v555_v8 = vpop.permute.xlu1 %554 }
 0x706   :  { %v3587_v9 = vmul.f32 %v555_v8, %v552_v6 }
 0x708   :  { %559 = vrot.lane.b32.xlu1 %v3587_v9, %s3300_s14 }
 0x77a   :  { %v560_v10 = vpop.permute.xlu1 %559 }
 0x77b   :  { %3016 = vmatmul.mubr.msk.f32.vlgmr.msra.gmra.mxu1 %vm196_vm4, %v560_v10 }
 0x77c   :  { %702 = vmatpush1.msra.mxu1 %v3489_v61  ;;  %737 = vmatprep.mubr.f32.mxu1 %v3294_v3 }
 0x77d   :  { %703 = vmatprep.subr.mxu1 %v3494_v62 }
 0x77e   :  { %704 = vmatpush1.msra.mxu1 %v3500_v63 }
 0x77f   :  { %2901 = vmatmul.mubr.msk.f32.vlgmr.msra.gmra.mxu1 %vm196_vm4, %v3595_v11  ;;  %3018 = vmatprep.subr.mxu1 %v3294_v3 }
 0x780   :  { %3019 = vmatpush3.msra.mxu1 %v3527_v17  ;;  %3022 = vmatprep.mubr.msk.f32.mxu1 %vm3297_vm5, %v3294_v3 }
 0x781   :  { %3020 = vmatprep.subr.mxu1 %v3294_v3 }
 0x782   :  { %3021 = vmatpush3.msra.mxu1 %v3532_v18 }
 0x783   :  { %3025 = vmatprep.subr.mxu1 %v3294_v3 }
 0x83b   :  { %v629_v13 = vpop.f32.mrf.mxu1 }
 0x83d   :  { %v3017_v14 = vpop.f32.mrf.mxu1 }
 0x83f   :  { %v739_v15 = vpop.f32.mrf.mxu1 }
 0x840   :  { %v744_v16 = vadd.f32 %v739_v15, %v3457_v46  ;;  %v961_v30 = vadd.f32 %v3460_v47, %v739_v15 }
 0x841   :  { %v741_v54 = vpop.f32.mrf.mxu1 }
 0x842   :  { %v745_v19 = vadd.f32 %v744_v16, %v530_v41  ;;  %v2906_v46 = vmul.f32 -1.442695, %v961_v30 }
 0x844   :  { %v2902_v20 = vmul.f32 -1.442695, %v745_v19 }
 0x846   :  { %3167 = vpow2.f32 %v2902_v20 }
 0x853   :  { %v3168_v21 = vpop.eup %3167 }
 0x854   :  { %v749_v22 = vadd.f32 1.0, %v3168_v21 }
 0x856   :  { %3169 = vrcp.f32 %v749_v22 }
 0x863   :  { %v3170_v23 = vpop.eup %3169 }
 0x864   :  { %v752_v25 = vmul.f32 %v3170_v23, %v3519_v12  ;;  %v759_v34 = vsub.f32 1.0, %v3170_v23 }
 0x866   :  { %754 = vrot.lane.b32.xlu1 %v752_v25, %s3295_s15 }
 0x8d8   :  { %v755_v26 = vpop.permute.xlu1 %754 }
 0x8d9   :  { %v757_v28 = vadd.f32 %v755_v26, %v745_v19 }
 0x8db   :  { %3171 = vtanh.f32 %v757_v28 }
 0x8dc   :  { %3173 = vpow2.f32 %v2906_v46 }
 0x8e8   :  { %v3172_v29 = vpop.eup %3171 }
 0x8e9   :  { %761 = vrot.lane.b32.xlu0 %v3172_v29, %s3296_s24  ;;  %v3174_v32 = vpop.eup %3173 }
 0x8ea   :  { %v965_v33 = vadd.f32 1.0, %v3174_v32 }
 0x8ec   :  { %3175 = vrcp.f32 %v965_v33 }
 0x8f9   :  { %v3176_v37 = vpop.eup %3175 }
 0x8fa   :  { %v968_v38 = vmul.f32 %v3176_v37, %v3477_v55  ;;  %v975_v45 = vsub.f32 1.0, %v3176_v37 }
 0x95b   :  { %v762_v35 = vpop.permute.xlu0 %761 }
 0x95c   :  { %v3612_v36 = vmul.f32 %v762_v35, %v759_v34 }
 0x95e   :  { %766 = vrot.lane.b32.xlu1 %v3612_v36, %s3298_s29 }
 0x962   :  { %849 = vrot.lane.b32.xlu1 %v629_v13, %s3301_s7  ;;  %v646_v13 = vld [vmem:[#allocation2 + $0x18] sm:$0xff] }
 0x963   :  { %v840_v14 = vadd.f32 %v646_v13, %v3569_v56 }
 0x965   :  { %v841_v15 = vadd.f32 %v840_v14, %v741_v54 }
 0x966   :  { %970 = vrot.lane.b32.xlu1 %v968_v38, %s3295_s15 }
 0x9d0   :  { %v767_v39 = vpop.permute.xlu1 %766 }
 0x9d1   :  { %3023 = vmatmul.mubr.msk.f32.vlgmr.msra.gmra.mxu1 %vm196_vm4, %v767_v39 }
 0x9d2   :  { %3026 = vmatpush3.msra.mxu1 %v3575_v4  ;;  %3029 = vmatprep.mubr.msk.f32.mxu1 %vm3297_vm5, %v3294_v3 }
 0x9d3   :  { %3027 = vmatprep.subr.mxu1 %v3294_v3 }
 0x9d4   :  { %v850_v40 = vpop.permute.xlu1 %849  ;;  %3028 = vmatpush3.msra.mxu1 %v3580_v7 }
 0x9d5   :  { %1014 = vmatprep.subr.mxu1 %v3484_v60 }
 0x9d8   :  { %v971_v41 = vpop.permute.xlu1 %970 }
 0x9d9   :  { %v973_v42 = vadd.f32 %v971_v41, %v961_v30 }
 0x9db   :  { %3177 = vtanh.f32 %v973_v42 }
 0x9e8   :  { %v3178_v43 = vpop.eup %3177 }
 0x9e9   :  { %977 = vrot.lane.b32.xlu1 %v3178_v43, %s3296_s24 }
 0xa5b   :  { %v978_v52 = vpop.permute.xlu1 %977 }
 0xa5c   :  { %v980_v53 = vmul.f32 %v978_v52, %v975_v45 }
 0xa5e   :  { %982 = vrot.lane.b32.xlu1 %v980_v53, %s3296_s24 }
 0xa91   :  { %v836_v57 = vpop.f32.mrf.mxu1 }
 0xa92   :  { %843 = vrot.lane.b32.xlu0 %v836_v57, %s3299_s30 }
 0xa93   :  { %v3024_v58 = vpop.f32.mrf.mxu1 }
 0xad0   :  { %v3641_v29 = vpop.permute.xlu1 %982 }
 0xb04   :  { %v844_v59 = vpop.permute.xlu0 %843 }
 0xb05   :  { %v846_v0 = vadd.f32 %v844_v59, %v744_v16  ;;  %v847_v19 = vadd.f32 %v844_v59, %v841_v15 }
 0xb07   :  { %v852_v1 = vadd.f32 %v850_v40, %v846_v0  ;;  %v853_v20 = vadd.f32 %v850_v40, %v847_v19 }
 0xb09   :  { %v2904_v2 = vmul.f32 -1.442695, %v852_v1 }
 0xb0b   :  { %3179 = vpow2.f32 %v2904_v2 }
 0xb18   :  { %v3180_v24 = vpop.eup %3179 }
 0xb19   :  { %v857_v6 = vadd.f32 1.0, %v3180_v24 }
 0xb1b   :  { %3181 = vrcp.f32 %v857_v6 }
 0xb28   :  { %v3182_v8 = vpop.eup %3181 }
 0xb29   :  { %v860_v10 = vmul.f32 %v3182_v8, %v3559_v31  ;;  %v867_v23 = vsub.f32 1.0, %v3182_v8 }
 0xb2b   :  { %862 = vrot.lane.b32.xlu0 %v860_v10, %s3295_s15 }
 0xb9d   :  { %v863_v21 = vpop.permute.xlu0 %862 }
 0xb9e   :  { %v865_v22 = vadd.f32 %v863_v21, %v853_v20 }
 0xba0   :  { %3183 = vtanh.f32 %v865_v22 }
 0xbad   :  { %v3184_v16 = vpop.eup %3183 }
 0xbae   :  { %869 = vrot.lane.b32.xlu0 %v3184_v16, %s3296_s24 }
 0xc20   :  { %v870_v25 = vpop.permute.xlu0 %869 }
 0xc21   :  { %v3633_v26 = vmul.f32 %v870_v25, %v867_v23 }
 0xc23   :  { %874 = vrot.lane.b32.xlu0 %v3633_v26, %s3300_s14 }
 0xc95   :  { %v875_v28 = vpop.permute.xlu0 %874 }
 0xc96   :  { %3030 = vmatmul.mubr.msk.f32.vlgmr.msra.gmra.mxu1 %vm196_vm4, %v875_v28 }
 0xc97   :  { %1015 = vmatpush1.msra.mxu1 %v3489_v61  ;;  %1050 = vmatprep.mubr.f32.mxu1 %v3294_v3 }
 0xc98   :  { %1016 = vmatprep.subr.mxu1 %v3494_v62 }
 0xc99   :  { %1017 = vmatpush1.msra.mxu1 %v3500_v63 }
 0xc9a   :  { %2907 = vmatmul.mubr.msk.f32.vlgmr.msra.gmra.mxu1 %vm196_vm4, %v3641_v29  ;;  %3039 = vmatprep.subr.mxu1 %v3294_v3 }
 0xc9b   :  { %3040 = vmatpush3.msra.mxu1 %v3575_v4  ;;  %3043 = vmatprep.mubr.msk.f32.mxu1 %vm3297_vm5, %v3294_v3 }
 0xc9c   :  { %3041 = vmatprep.subr.mxu1 %v3294_v3 }
 0xc9d   :  { %3042 = vmatpush3.msra.mxu1 %v3580_v7 }
 0xc9e   :  { %3046 = vmatprep.subr.mxu1 %v3294_v3 }
 0xd56   :  { %v944_v30 = vpop.f32.mrf.mxu1 }
 0xd58   :  { %v3031_v46 = vpop.f32.mrf.mxu1 }
 0xd5a   :  { %v1052_v32 = vpop.f32.mrf.mxu1 }
 0xd5b   :  { %v1057_v33 = vadd.f32 %v1052_v32, %v3460_v47  ;;  %v1274_v34 = vadd.f32 %v3463_v48, %v1052_v32 }
 0xd5d   :  { %v1058_v35 = vadd.f32 %v1057_v33, %v844_v59  ;;  %v2912_v37 = vmul.f32 -1.442695, %v1274_v34 }
 0xd5f   :  { %v2908_v38 = vmul.f32 -1.442695, %v1058_v35  ;;  %3185 = vpow2.f32 %v2912_v37 }
 0xd61   :  { %3187 = vpow2.f32 %v2908_v38 }
 0xd6c   :  { %v3186_v39 = vpop.eup %3185 }
 0xd6d   :  { %v1278_v40 = vadd.f32 1.0, %v3186_v39 }
 0xd6e   :  { %v3188_v41 = vpop.eup %3187 }
 0xd6f   :  { %v1062_v42 = vadd.f32 1.0, %v3188_v41  ;;  %3189 = vrcp.f32 %v1278_v40 }
 0xd71   :  { %3191 = vrcp.f32 %v1062_v42 }
 0xd7c   :  { %v3190_v43 = vpop.eup %3189 }
 0xd7d   :  { %v1281_v45 = vmul.f32 %v3190_v43, %v3477_v55  ;;  %v1288_v6 = vsub.f32 1.0, %v3190_v43 }
 0xd7e   :  { %v3192_v52 = vpop.eup %3191 }
 0xd7f   :  { %1283 = vrot.lane.b32.xlu1 %v1281_v45, %s3295_s15  ;;  %v1065_v47 = vmul.f32 %v3192_v52, %v3519_v12  ;;  %v1072_v1 = vsub.f32 1.0, %v3192_v52 }
 0xd81   :  { %1067 = vrot.lane.b32.xlu0 %v1065_v47, %s3295_s15  ;;  %v959_v47 = vld [vmem:[#allocation2 + $0x28] sm:$0xff] }
 0xdf1   :  { %v1284_v53 = vpop.permute.xlu1 %1283 }
 0xdf2   :  { %v1286_v58 = vadd.f32 %v1284_v53, %v1274_v34  ;;  %v1054_v53 = vpop.f32.mrf.mxu1 }
 0xdf3   :  { %v1068_v54 = vpop.permute.xlu0 %1067 }
 0xdf4   :  { %v1070_v57 = vadd.f32 %v1068_v54, %v1058_v35  ;;  %v1153_v54 = vadd.f32 %v959_v47, %v3569_v56 }
 0xdf6   :  { %3193 = vtanh.f32 %v1070_v57  ;;  %v1154_v57 = vadd.f32 %v1153_v54, %v1054_v53 }
 0xdf7   :  { %3195 = vtanh.f32 %v1286_v58 }
 0xe03   :  { %v3194_v59 = vpop.eup %3193 }
 0xe04   :  { %1074 = vrot.lane.b32.xlu0 %v3194_v59, %s3296_s24  ;;  %v3196_v0 = vpop.eup %3195 }
 0xe08   :  { %1290 = vrot.lane.b32.xlu0 %v3196_v0, %s3296_s24 }
 0xe76   :  { %v1075_v2 = vpop.permute.xlu0 %1074 }
 0xe77   :  { %v3661_v24 = vmul.f32 %v1075_v2, %v1072_v1 }
 0xe79   :  { %1079 = vrot.lane.b32.xlu1 %v3661_v24, %s3298_s29 }
 0xe7a   :  { %v1291_v8 = vpop.permute.xlu0 %1290 }
 0xe7b   :  { %v1293_v10 = vmul.f32 %v1291_v8, %v1288_v6 }
 0xe7d   :  { %1295 = vrot.lane.b32.xlu1 %v1293_v10, %s3296_s24 }
 0xe81   :  { %1162 = vrot.lane.b32.xlu1 %v944_v30, %s3301_s7 }
 0xeeb   :  { %v1080_v13 = vpop.permute.xlu1 %1079 }
 0xeec   :  { %3037 = vmatmul.mubr.msk.f32.vlgmr.msra.gmra.mxu0 %vm196_vm4, %v1080_v13 }
 0xeed   :  { %1328 = vmatpush1.msra.mxu0 %v3489_v61  ;;  %1363 = vmatprep.mubr.f32.mxu0 %v3294_v3 }
 0xeee   :  { %1329 = vmatprep.subr.mxu0 %v3494_v62 }
 0xeef   :  { %1330 = vmatpush1.msra.mxu0 %v3500_v63  ;;  %v3672_v14 = vpop.permute.xlu1 %1295 }
 0xef0   :  { %2913 = vmatmul.mubr.msk.f32.vlgmr.msra.gmra.mxu0 %vm196_vm4, %v3672_v14  ;;  %3053 = vmatprep.subr.mxu0 %v3294_v3 }
 0xef1   :  { %3054 = vmatpush3.msra.mxu0 %v3575_v4  ;;  %3057 = vmatprep.mubr.msk.f32.mxu0 %vm3297_vm5, %v3294_v3 }
 0xef2   :  { %3055 = vmatprep.subr.mxu0 %v3294_v3 }
 0xef3   :  { %3056 = vmatpush3.msra.mxu0 %v3580_v7  ;;  %v1163_v30 = vpop.permute.xlu1 %1162 }
 0xef4   :  { %3060 = vmatprep.subr.mxu0 %v3294_v3 }
 0xfac   :  { %v1149_v15 = vpop.f32.mrf.mxu0 }
 0xfad   :  { %1156 = vrot.lane.b32.xlu0 %v1149_v15, %s3299_s30 }
 0xfae   :  { %v3038_v19 = vpop.f32.mrf.mxu0 }
 0xfb0   :  { %v1365_v20 = vpop.f32.mrf.mxu0 }
 0xfb1   :  { %v1587_v21 = vadd.f32 %v3466_v49, %v1365_v20  ;;  %v3686_v22 = vadd.f32 %v1365_v20, %v3463_v48 }
 0xfb3   :  { %v2918_v16 = vmul.f32 -1.442695, %v1587_v21 }
 0xfb5   :  { %3197 = vpow2.f32 %v2918_v16 }
 0xfc2   :  { %v3198_v35 = vpop.eup %3197 }
 0xfc3   :  { %v1591_v40 = vadd.f32 1.0, %v3198_v35 }
0x101f   :  { %v1157_v23 = vpop.permute.xlu0 %1156 }
0x1020   :  { %v1159_v25 = vadd.f32 %v1157_v23, %v1057_v33  ;;  %v1371_v28 = vadd.f32 %v3686_v22, %v1157_v23  ;;  %v1160_v58 = vadd.f32 %v1157_v23, %v1154_v57 }
0x1022   :  { %v1165_v46 = vadd.f32 %v1163_v30, %v1159_v25  ;;  %v2914_v32 = vmul.f32 -1.442695, %v1371_v28  ;;  %v1166_v1 = vadd.f32 %v1163_v30, %v1160_v58 }
0x1024   :  { %v2910_v34 = vmul.f32 -1.442695, %v1165_v46  ;;  %3199 = vpow2.f32 %v2914_v32 }
0x1026   :  { %3201 = vpow2.f32 %v2910_v34 }
0x1031   :  { %v3200_v37 = vpop.eup %3199 }
0x1032   :  { %v1375_v38 = vadd.f32 1.0, %v3200_v37 }
0x1033   :  { %v3202_v39 = vpop.eup %3201 }
0x1034   :  { %v1170_v41 = vadd.f32 1.0, %v3202_v39  ;;  %3203 = vrcp.f32 %v1375_v38 }
0x1036   :  { %3205 = vrcp.f32 %v1170_v41 }
0x1037   :  { %3207 = vrcp.f32 %v1591_v40 }
0x1041   :  { %v3204_v48 = vpop.eup %3203 }
0x1042   :  { %v1378_v33 = vmul.f32 %v3204_v48, %v3519_v12  ;;  %v1385_v19 = vsub.f32 1.0, %v3204_v48 }
0x1043   :  { %v3206_v42 = vpop.eup %3205 }
0x1044   :  { %1380 = vrot.lane.b32.xlu1 %v1378_v33, %s3295_s15  ;;  %v1173_v43 = vmul.f32 %v3206_v42, %v3559_v31  ;;  %v3208_v45 = vpop.eup %3207  ;;  %v1180_v23 = vsub.f32 1.0, %v3206_v42 }
0x1045   :  { %v1594_v52 = vmul.f32 %v3208_v45, %v3477_v55 }
0x1046   :  { %1175 = vrot.lane.b32.xlu0 %v1173_v43, %s3295_s15 }
0x104a   :  { %1596 = vrot.lane.b32.xlu0 %v1594_v52, %s3295_s15 }
0x10b6   :  { %v1381_v59 = vpop.permute.xlu1 %1380 }
0x10b7   :  { %v1383_v0 = vadd.f32 %v1381_v59, %v1371_v28 }
0x10b8   :  { %v1176_v2 = vpop.permute.xlu0 %1175 }
0x10b9   :  { %3209 = vtanh.f32 %v1383_v0  ;;  %v1178_v6 = vadd.f32 %v1176_v2, %v1166_v1 }
0x10bb   :  { %3211 = vtanh.f32 %v1178_v6 }
0x10bc   :  { %v1597_v13 = vpop.permute.xlu0 %1596 }
0x10bd   :  { %v1599_v15 = vadd.f32 %v1597_v13, %v1587_v21  ;;  %v1601_v21 = vsub.f32 1.0, %v3208_v45 }
0x10bf   :  { %3213 = vtanh.f32 %v1599_v15 }
0x10c6   :  { %v3210_v8 = vpop.eup %3209 }
0x10c7   :  { %1387 = vrot.lane.b32.xlu0 %v3210_v8, %s3296_s24 }
0x10c8   :  { %v3212_v10 = vpop.eup %3211 }
0x10c9   :  { %1182 = vrot.lane.b32.xlu1 %v3212_v10, %s3296_s24 }
0x10cc   :  { %v3214_v30 = vpop.eup %3213 }
0x1139   :  { %v1388_v20 = vpop.permute.xlu0 %1387 }
0x113a   :  { %v3698_v16 = vmul.f32 %v1388_v20, %v1385_v19  ;;  %v1272_v20 = vld [vmem:[#allocation2 + $0x38] sm:$0xff] }
0x113b   :  { %v1183_v25 = vpop.permute.xlu1 %1182 }
0x113c   :  { %v3700_v28 = vmul.f32 %v1183_v25, %v1180_v23  ;;  %1392 = vrot.lane.b32.xlu0 %v3698_v16, %s3298_s29  ;;  %v1367_v23 = vpop.f32.mrf.mxu0  ;;  %v1466_v25 = vadd.f32 %v1272_v20, %v3569_v56 }
0x113e   :  { %1187 = vrot.lane.b32.xlu1 %v3700_v28, %s3300_s14 }
0x1142   :  { %1603 = vrot.lane.b32.xlu1 %v3214_v30, %s3296_s24  ;;  %v1467_v30 = vadd.f32 %v1466_v25, %v1367_v23 }
0x11ae   :  { %v1393_v32 = vpop.permute.xlu0 %1392 }
0x11b0   :  { %v1188_v46 = vpop.permute.xlu1 %1187 }
0x11b1   :  { %3044 = vmatmul.mubr.msk.f32.vlgmr.msra.gmra.mxu1 %vm196_vm4, %v1188_v46 }
0x11b2   :  { %3047 = vmatpush3.msra.mxu1 %v3527_v17  ;;  %3050 = vmatprep.mubr.msk.f32.mxu1 %vm3297_vm5, %v3294_v3 }
0x11b3   :  { %3048 = vmatprep.subr.mxu1 %v3294_v3 }
0x11b4   :  { %3049 = vmatpush3.msra.mxu1 %v3532_v18  ;;  %v1604_v34 = vpop.permute.xlu1 %1603 }
0x11b5   :  { %v1606_v35 = vmul.f32 %v1604_v34, %v1601_v21  ;;  %3051 = vmatmul.mubr.msk.f32.vlgmr.msra.gmra.mxu1 %vm196_vm4, %v1393_v32  ;;  %1640 = vmatprep.subr.mxu1 %v3484_v60 }
0x11b6   :  { %1641 = vmatpush1.msra.mxu1 %v3489_v61  ;;  %1676 = vmatprep.mubr.f32.mxu1 %v3294_v3 }
0x11b7   :  { %1608 = vrot.lane.b32.xlu0 %v1606_v35, %s3296_s24  ;;  %1642 = vmatprep.subr.mxu1 %v3494_v62 }
0x11b8   :  { %1643 = vmatpush1.msra.mxu1 %v3500_v63 }
0x11b9   :  { %3067 = vmatprep.subr.mxu1 %v3294_v3 }
0x1229   :  { %v3721_v37 = vpop.permute.xlu0 %1608 }
0x122a   :  { %2919 = vmatmul.mubr.msk.f32.vlgmr.msra.gmra.mxu1 %vm196_vm4, %v3721_v37 }
0x122b   :  { %3068 = vmatpush3.msra.mxu1 %v3575_v4  ;;  %3071 = vmatprep.mubr.msk.f32.mxu1 %vm3297_vm5, %v3294_v3 }
0x122c   :  { %3069 = vmatprep.subr.mxu1 %v3294_v3 }
0x122d   :  { %3070 = vmatpush3.msra.mxu1 %v3580_v7 }
0x122e   :  { %3074 = vmatprep.subr.mxu1 %v3294_v3 }
0x1271   :  { %v1257_v38 = vpop.f32.mrf.mxu1 }
0x1272   :  { %1475 = vrot.lane.b32.xlu0 %v1257_v38, %s3301_s7 }
0x1273   :  { %v3045_v39 = vpop.f32.mrf.mxu1 }
0x1275   :  { %v1462_v40 = vpop.f32.mrf.mxu1 }
0x1276   :  { %1469 = vrot.lane.b32.xlu1 %v1462_v40, %s3299_s30 }
0x1277   :  { %v3052_v41 = vpop.f32.mrf.mxu1 }
0x12e4   :  { %v1476_v42 = vpop.permute.xlu0 %1475 }
0x12e8   :  { %v1470_v48 = vpop.permute.xlu1 %1469 }
0x12e9   :  { %v1472_v33 = vadd.f32 %v1470_v48, %v3686_v22  ;;  %v1473_v46 = vadd.f32 %v1470_v48, %v1467_v30 }
0x12ea   :  { %v1678_v43 = vpop.f32.mrf.mxu1 }
0x12eb   :  { %v1478_v45 = vadd.f32 %v1476_v42, %v1472_v33  ;;  %v3735_v52 = vadd.f32 %v1678_v43, %v3466_v49  ;;  %v1900_v47 = vadd.f32 %v3469_v50, %v1678_v43  ;;  %v1479_v21 = vadd.f32 %v1476_v42, %v1473_v46 }
0x12ed   :  { %v2916_v53 = vmul.f32 -1.442695, %v1478_v45  ;;  %v1684_v54 = vadd.f32 %v3735_v52, %v1470_v48  ;;  %v2924_v57 = vmul.f32 -1.442695, %v1900_v47 }
0x12ef   :  { %3215 = vpow2.f32 %v2916_v53  ;;  %v2920_v58 = vmul.f32 -1.442695, %v1684_v54 }
0x12f0   :  { %3217 = vpow2.f32 %v2924_v57 }
0x12f1   :  { %3219 = vpow2.f32 %v2920_v58 }
0x12fc   :  { %v3216_v59 = vpop.eup %3215 }
0x12fd   :  { %v3218_v0 = vpop.eup %3217  ;;  %v1483_v1 = vadd.f32 1.0, %v3216_v59 }
0x12fe   :  { %v3220_v22 = vpop.eup %3219  ;;  %v1904_v2 = vadd.f32 1.0, %v3218_v0 }
0x12ff   :  { %3221 = vrcp.f32 %v1483_v1  ;;  %v1688_v6 = vadd.f32 1.0, %v3220_v22 }
0x1300   :  { %3223 = vrcp.f32 %v1904_v2 }
0x1301   :  { %3225 = vrcp.f32 %v1688_v6 }
0x130c   :  { %v3222_v49 = vpop.eup %3221 }
0x130d   :  { %v3224_v8 = vpop.eup %3223  ;;  %v1486_v10 = vmul.f32 %v3222_v49, %v3559_v31  ;;  %v1493_v43 = vsub.f32 1.0, %v3222_v49 }
0x130e   :  { %v3226_v13 = vpop.eup %3225  ;;  %v1907_v19 = vmul.f32 %v3224_v8, %v3477_v55 }
0x130f   :  { %1488 = vrot.lane.b32.xlu1 %v1486_v10, %s3295_s15  ;;  %v1691_v15 = vmul.f32 %v3226_v13, %v3519_v12  ;;  %v1698_v48 = vsub.f32 1.0, %v3226_v13 }
0x1311   :  { %1693 = vrot.lane.b32.xlu0 %v1691_v15, %s3295_s15 }
0x1313   :  { %1909 = vrot.lane.b32.xlu1 %v1907_v19, %s3295_s15 }
0x1381   :  { %v1489_v32 = vpop.permute.xlu1 %1488 }
0x1382   :  { %v1491_v34 = vadd.f32 %v1489_v32, %v1479_v21 }
0x1383   :  { %v1694_v35 = vpop.permute.xlu0 %1693 }
0x1384   :  { %3227 = vtanh.f32 %v1491_v34  ;;  %v1696_v38 = vadd.f32 %v1694_v35, %v1684_v54 }
0x1385   :  { %v1910_v41 = vpop.permute.xlu1 %1909 }
0x1386   :  { %3229 = vtanh.f32 %v1696_v38  ;;  %v1912_v33 = vadd.f32 %v1910_v41, %v1900_v47  ;;  %v1914_v47 = vsub.f32 1.0, %v3224_v8 }
0x1388   :  { %3231 = vtanh.f32 %v1912_v33  ;;  %v1585_v33 = vld [vmem:[#allocation2 + $0x48] sm:$0xff] }
0x1391   :  { %v3228_v39 = vpop.eup %3227 }
0x1392   :  { %1495 = vrot.lane.b32.xlu0 %v3228_v39, %s3296_s24 }
0x1393   :  { %v3230_v40 = vpop.eup %3229 }
0x1394   :  { %1700 = vrot.lane.b32.xlu1 %v3230_v40, %s3296_s24 }
0x1395   :  { %v3232_v54 = vpop.eup %3231 }
0x1404   :  { %v1496_v45 = vpop.permute.xlu0 %1495 }
0x1405   :  { %v3748_v53 = vmul.f32 %v1496_v45, %v1493_v43  ;;  %v1680_v43 = vpop.f32.mrf.mxu1  ;;  %v1779_v45 = vadd.f32 %v1585_v33, %v3569_v56 }
0x1406   :  { %v1701_v42 = vpop.permute.xlu1 %1700 }
0x1407   :  { %v3750_v57 = vmul.f32 %v1701_v42, %v1698_v48  ;;  %1500 = vrot.lane.b32.xlu0 %v3748_v53, %s3300_s14  ;;  %v1780_v48 = vadd.f32 %v1779_v45, %v1680_v43 }
0x1409   :  { %1705 = vrot.lane.b32.xlu1 %v3750_v57, %s3298_s29 }
0x140b   :  { %1916 = vrot.lane.b32.xlu0 %v3232_v54, %s3296_s24 }
0x1479   :  { %v1501_v58 = vpop.permute.xlu0 %1500 }
0x147a   :  { %3058 = vmatmul.mubr.msk.f32.vlgmr.msra.gmra.mxu0 %vm196_vm4, %v1501_v58 }
0x147b   :  { %3061 = vmatpush3.msra.mxu0 %v3527_v17  ;;  %3064 = vmatprep.mubr.msk.f32.mxu0 %vm3297_vm5, %v3294_v3  ;;  %v1706_v59 = vpop.permute.xlu1 %1705 }
0x147c   :  { %3062 = vmatprep.subr.mxu0 %v3294_v3 }
0x147d   :  { %3063 = vmatpush3.msra.mxu0 %v3532_v18  ;;  %v1917_v0 = vpop.permute.xlu0 %1916 }
0x147e   :  { %v1919_v1 = vmul.f32 %v1917_v0, %v1914_v47  ;;  %3065 = vmatmul.mubr.msk.f32.vlgmr.msra.gmra.mxu0 %vm196_vm4, %v1706_v59  ;;  %1953 = vmatprep.subr.mxu0 %v3484_v60 }
0x147f   :  { %1954 = vmatpush1.msra.mxu0 %v3489_v61  ;;  %1989 = vmatprep.mubr.f32.mxu0 %v3294_v3 }
0x1480   :  { %1921 = vrot.lane.b32.xlu1 %v1919_v1, %s3296_s24  ;;  %1955 = vmatprep.subr.mxu0 %v3494_v62 }
0x1481   :  { %1956 = vmatpush1.msra.mxu0 %v3500_v63 }
0x1482   :  { %3081 = vmatprep.subr.mxu0 %v3294_v3 }
0x14f2   :  { %v3771_v22 = vpop.permute.xlu1 %1921 }
0x14f3   :  { %2925 = vmatmul.mubr.msk.f32.vlgmr.msra.gmra.mxu0 %vm196_vm4, %v3771_v22 }
0x14f4   :  { %3082 = vmatpush3.msra.mxu0 %v3575_v4  ;;  %3085 = vmatprep.mubr.msk.f32.mxu0 %vm3297_vm5, %v3294_v3 }
0x14f5   :  { %3083 = vmatprep.subr.mxu0 %v3294_v3 }
0x14f6   :  { %3084 = vmatpush3.msra.mxu0 %v3580_v7 }
0x14f7   :  { %3088 = vmatprep.subr.mxu0 %v3294_v3 }
0x153a   :  { %v1570_v60 = vpop.f32.mrf.mxu0 }
0x153b   :  { %1788 = vrot.lane.b32.xlu1 %v1570_v60, %s3301_s7 }
0x153c   :  { %v3059_v61 = vpop.f32.mrf.mxu0 }
0x153e   :  { %v1775_v62 = vpop.f32.mrf.mxu0 }
0x153f   :  { %1782 = vrot.lane.b32.xlu0 %v1775_v62, %s3299_s30 }
0x1540   :  { %v3066_v63 = vpop.f32.mrf.mxu0 }
0x15ad   :  { %v1789_v49 = vpop.permute.xlu1 %1788 }
0x15b1   :  { %v1783_v2 = vpop.permute.xlu0 %1782 }
0x15b2   :  { %v1785_v6 = vadd.f32 %v1783_v2, %v3735_v52  ;;  %v1786_v42 = vadd.f32 %v1783_v2, %v1780_v48 }
0x15b3   :  { %v1991_v8 = vpop.f32.mrf.mxu0 }
0x15b4   :  { %v1791_v10 = vadd.f32 %v1789_v49, %v1785_v6  ;;  %v3785_v13 = vadd.f32 %v1991_v8, %v3469_v50  ;;  %v2213_v15 = vadd.f32 %v3472_v51, %v1991_v8  ;;  %v1792_v54 = vadd.f32 %v1789_v49, %v1786_v42 }
0x15b6   :  { %v2922_v19 = vmul.f32 -1.442695, %v1791_v10  ;;  %v1997_v20 = vadd.f32 %v3785_v13, %v1783_v2  ;;  %v2930_v23 = vmul.f32 -1.442695, %v2213_v15 }
0x15b8   :  { %3233 = vpow2.f32 %v2922_v19  ;;  %v2926_v25 = vmul.f32 -1.442695, %v1997_v20 }
0x15b9   :  { %3235 = vpow2.f32 %v2930_v23 }
0x15ba   :  { %3237 = vpow2.f32 %v2926_v25 }
0x15c5   :  { %v3234_v30 = vpop.eup %3233 }
0x15c6   :  { %v3236_v46 = vpop.eup %3235  ;;  %v1796_v21 = vadd.f32 1.0, %v3234_v30  ;;  %v3817_v30 = vld [vmem:[%s4022_s5 + $0x18] sm:$0xff] }
0x15c7   :  { %v3238_v52 = vpop.eup %3237  ;;  %v2217_v32 = vadd.f32 1.0, %v3236_v46  ;;  %v3837_v46 = vld [vmem:[%s4022_s5] sm:$0xff] }
0x15c8   :  { %3239 = vrcp.f32 %v1796_v21  ;;  %v2001_v34 = vadd.f32 1.0, %v3238_v52 }
0x15c9   :  { %3241 = vrcp.f32 %v2217_v32 }
0x15ca   :  { %3243 = vrcp.f32 %v2001_v34 }
0x15d5   :  { %v3240_v50 = vpop.eup %3239 }
0x15d6   :  { %v3242_v35 = vpop.eup %3241  ;;  %v1799_v38 = vmul.f32 %v3240_v50, %v3559_v31  ;;  %v1806_v62 = vsub.f32 1.0, %v3240_v50 }
0x15d7   :  { %v3244_v39 = vpop.eup %3243  ;;  %v2220_v41 = vmul.f32 %v3242_v35, %v3477_v55 }
0x15d8   :  { %1801 = vrot.lane.b32.xlu0 %v1799_v38, %s3295_s15  ;;  %v2004_v40 = vmul.f32 %v3244_v39, %v3519_v12  ;;  %v2011_v2 = vsub.f32 1.0, %v3244_v39 }
0x15da   :  { %2006 = vrot.lane.b32.xlu1 %v2004_v40, %s3295_s15 }
0x15dc   :  { %2222 = vrot.lane.b32.xlu0 %v2220_v41, %s3295_s15 }
0x164a   :  { %v1802_v58 = vpop.permute.xlu0 %1801 }
0x164b   :  { %v1804_v47 = vadd.f32 %v1802_v58, %v1792_v54 }
0x164c   :  { %v2007_v59 = vpop.permute.xlu1 %2006 }
0x164d   :  { %3245 = vtanh.f32 %v1804_v47  ;;  %v2009_v0 = vadd.f32 %v2007_v59, %v1997_v20 }
0x164e   :  { %v2223_v55 = vpop.permute.xlu0 %2222 }
0x164f   :  { %3247 = vtanh.f32 %v2009_v0  ;;  %v2225_v61 = vadd.f32 %v2223_v55, %v2213_v15  ;;  %v2227_v15 = vsub.f32 1.0, %v3242_v35  ;;  %v2523_v35 = vld [vmem:[#allocation2 + $0x70] sm:$0xff] }
0x1650   :  { %v3855_v39 = vadd.f32 %v2523_v35, %v3453_v44 }
0x1651   :  { %3249 = vtanh.f32 %v2225_v61 }
0x165a   :  { %v3246_v1 = vpop.eup %3245 }
0x165b   :  { %1808 = vrot.lane.b32.xlu1 %v3246_v1, %s3296_s24 }
0x165c   :  { %v3248_v60 = vpop.eup %3247 }
0x165d   :  { %2013 = vrot.lane.b32.xlu0 %v3248_v60, %s3296_s24 }
0x165e   :  { %v3250_v10 = vpop.eup %3249 }
0x16cd   :  { %v1809_v63 = vpop.permute.xlu1 %1808 }
0x16ce   :  { %v3798_v6 = vmul.f32 %v1809_v63, %v1806_v62  ;;  %v3291_v62 = vld [vmem:[%s4021_s8] ss:$0 sm:$0xff] }
0x16cf   :  { %v2014_v49 = vpop.permute.xlu0 %2013 }
0x16d0   :  { %v3800_v8 = vmul.f32 %v2014_v49, %v2011_v2  ;;  %1813 = vrot.lane.b32.xlu1 %v3798_v6, %s3300_s14  ;;  %v1898_v2 = vld [vmem:[#allocation2 + $0x58] sm:$0xff]  ;;  %v1993_v49 = vpop.f32.mrf.mxu0 }
0x16d2   :  { %2018 = vrot.lane.b32.xlu0 %v3800_v8, %s3298_s29 }
0x16d4   :  { %2229 = vrot.lane.b32.xlu1 %v3250_v10, %s3296_s24  ;;  %v2092_v10 = vadd.f32 %v1898_v2, %v3569_v56 }
0x1742   :  { %v1814_v19 = vpop.permute.xlu1 %1813 }
0x1743   :  { %3072 = vmatmul.mubr.msk.f32.vlgmr.msra.gmra.mxu1 %vm196_vm4, %v1814_v19  ;;  %v2093_v19 = vadd.f32 %v2092_v10, %v1993_v49 }
0x1744   :  { %3075 = vmatpush3.msra.mxu1 %v3527_v17  ;;  %3078 = vmatprep.mubr.msk.f32.mxu1 %vm3297_vm5, %v3294_v3  ;;  %v2019_v20 = vpop.permute.xlu0 %2018  ;;  %v3823_v17 = vld [vmem:[%s4022_s5 + $0x10] sm:$0xff] }
0x1745   :  { %3076 = vmatprep.subr.mxu1 %v3294_v3 }
0x1746   :  { %3077 = vmatpush3.msra.mxu1 %v3532_v18  ;;  %v2230_v23 = vpop.permute.xlu1 %2229  ;;  %v3831_v18 = vld [vmem:[%s4022_s5 + $0x8] sm:$0xff] }
0x1747   :  { %v2232_v25 = vmul.f32 %v2230_v23, %v2227_v15  ;;  %3079 = vmatmul.mubr.msk.f32.vlgmr.msra.gmra.mxu1 %vm196_vm4, %v2019_v20  ;;  %2266 = vmatprep.subr.mxu1 %v3817_v30 }
0x1748   :  { %2267 = vmatpush1.msra.mxu1 %v3823_v17  ;;  %2302 = vmatprep.mubr.f32.mxu1 %v3294_v3 }
0x1749   :  { %2234 = vrot.lane.b32.xlu0 %v2232_v25, %s3296_s24  ;;  %2268 = vmatprep.subr.mxu1 %v3831_v18 }
0x174a   :  { %2269 = vmatpush1.msra.mxu1 %v3837_v46 }
0x174b   :  { %3095 = vmatprep.subr.mxu1 %v3294_v3 }
0x17bb   :  { %v3841_v21 = vpop.permute.xlu0 %2234 }
0x17bc   :  { %2931 = vmatmul.mubr.msk.f32.vlgmr.msra.gmra.mxu1 %vm196_vm4, %v3841_v21 }
0x17bd   :  { %3096 = vmatpush3.msra.mxu1 %v3575_v4  ;;  %3099 = vmatprep.mubr.msk.f32.mxu1 %vm3297_vm5, %v3294_v3 }
0x17be   :  { %3097 = vmatprep.subr.mxu1 %v3294_v3 }
0x17bf   :  { %3098 = vmatpush3.msra.mxu1 %v3580_v7 }
0x17c0   :  { %3102 = vmatprep.subr.mxu1 %v3294_v3 }
0x1803   :  { %v1883_v52 = vpop.f32.mrf.mxu1 }
0x1804   :  { %2101 = vrot.lane.b32.xlu0 %v1883_v52, %s3301_s7 }
0x1805   :  { %v3073_v32 = vpop.f32.mrf.mxu1 }
0x1807   :  { %v2088_v34 = vpop.f32.mrf.mxu1 }
0x1808   :  { %2095 = vrot.lane.b32.xlu1 %v2088_v34, %s3299_s30 }
0x1809   :  { %v3080_v50 = vpop.f32.mrf.mxu1 }
0x1876   :  { %v2102_v40 = vpop.permute.xlu0 %2101 }
0x187a   :  { %v2096_v38 = vpop.permute.xlu1 %2095 }
0x187b   :  { %v2098_v4 = vadd.f32 %v2096_v38, %v3785_v13  ;;  %v2099_v15 = vadd.f32 %v2096_v38, %v2093_v19 }
0x187c   :  { %v2304_v41 = vpop.f32.mrf.mxu1 }
0x187d   :  { %v2104_v7 = vadd.f32 %v2102_v40, %v2098_v4  ;;  %v3858_v33 = vadd.f32 %v2304_v41, %v3472_v51  ;;  %v2526_v43 = vadd.f32 %v3855_v39, %v2304_v41  ;;  %v2105_v20 = vadd.f32 %v2102_v40, %v2099_v15 }
0x187f   :  { %v2928_v45 = vmul.f32 -1.442695, %v2104_v7  ;;  %v2310_v48 = vadd.f32 %v3858_v33, %v2096_v38  ;;  %v2936_v42 = vmul.f32 -1.442695, %v2526_v43 }
0x1881   :  { %3251 = vpow2.f32 %v2928_v45  ;;  %v2932_v54 = vmul.f32 -1.442695, %v2310_v48 }
0x1882   :  { %3253 = vpow2.f32 %v2936_v42 }
0x1883   :  { %3255 = vpow2.f32 %v2932_v54 }
0x188e   :  { %v3252_v13 = vpop.eup %3251 }
0x188f   :  { %v3254_v58 = vpop.eup %3253  ;;  %v2109_v44 = vadd.f32 1.0, %v3252_v13 }
0x1890   :  { %v3256_v47 = vpop.eup %3255  ;;  %v2530_v59 = vadd.f32 1.0, %v3254_v58 }
0x1891   :  { %3257 = vrcp.f32 %v2109_v44  ;;  %v2314_v0 = vadd.f32 1.0, %v3256_v47  ;;  %v3895_v44 = vld [vmem:[%s4023_s6] sm:$0xff] }
0x1892   :  { %3259 = vrcp.f32 %v2530_v59 }
0x1893   :  { %3261 = vrcp.f32 %v2314_v0 }
0x189e   :  { %v3258_v51 = vpop.eup %3257 }
0x189f   :  { %v3260_v1 = vpop.eup %3259  ;;  %v2112_v60 = vmul.f32 %v3258_v51, %v3559_v31  ;;  %v2119_v41 = vsub.f32 1.0, %v3258_v51 }
0x18a0   :  { %v3262_v55 = vpop.eup %3261  ;;  %v2533_v63 = vmul.f32 %v3291_v62, %v3260_v1  ;;  %v2540_v13 = vsub.f32 1.0, %v3260_v1 }
0x18a1   :  { %2114 = vrot.lane.b32.xlu1 %v2112_v60, %s3295_s15  ;;  %v2317_v61 = vmul.f32 %v3262_v55, %v3519_v12  ;;  %v2324_v38 = vsub.f32 1.0, %v3262_v55 }
0x18a3   :  { %2319 = vrot.lane.b32.xlu0 %v2317_v61, %s3295_s15 }
0x18a5   :  { %2535 = vrot.lane.b32.xlu1 %v2533_v63, %s3295_s15 }
0x1913   :  { %v2115_v23 = vpop.permute.xlu1 %2114 }
0x1914   :  { %v2117_v25 = vadd.f32 %v2115_v23, %v2105_v20 }
0x1915   :  { %v2320_v52 = vpop.permute.xlu0 %2319 }
0x1916   :  { %3263 = vtanh.f32 %v2117_v25  ;;  %v2322_v32 = vadd.f32 %v2320_v52, %v2310_v48 }
0x1917   :  { %v2536_v35 = vpop.permute.xlu1 %2535 }
0x1918   :  { %3265 = vtanh.f32 %v2322_v32  ;;  %v2538_v4 = vadd.f32 %v2536_v35, %v2526_v43  ;;  %v3886_v43 = vld [vmem:[%s4023_s6 + $0x8] sm:$0xff]  ;;  %v2306_v32 = vpop.f32.mrf.mxu1  ;;  %s3302_s6 = smov 80  }
0x191a   :  { %3267 = vtanh.f32 %v2538_v4 }
0x1923   :  { %v3264_v34 = vpop.eup %3263 }
0x1924   :  { %2121 = vrot.lane.b32.xlu0 %v3264_v34, %s3296_s24 }
0x1925   :  { %v3266_v50 = vpop.eup %3265 }
0x1926   :  { %2326 = vrot.lane.b32.xlu1 %v3266_v50, %s3296_s24 }
0x1927   :  { %v3268_v48 = vpop.eup %3267 }
0x1996   :  { %v2122_v7 = vpop.permute.xlu0 %2121 }
0x1997   :  { %v3873_v45 = vmul.f32 %v2122_v7, %v2119_v41 }
0x1998   :  { %v2327_v40 = vpop.permute.xlu1 %2326 }
0x1999   :  { %v3875_v42 = vmul.f32 %v2327_v40, %v2324_v38  ;;  %2126 = vrot.lane.b32.xlu0 %v3873_v45, %s3300_s14 }
0x199b   :  { %2331 = vrot.lane.b32.xlu1 %v3875_v42, %s3298_s29 }
0x199d   :  { %2542 = vrot.lane.b32.xlu0 %v3268_v48, %s3296_s24 }
0x1a0b   :  { %v2127_v54 = vpop.permute.xlu0 %2126 }
0x1a0c   :  { %3086 = vmatmul.mubr.msk.f32.vlgmr.msra.gmra.mxu0 %vm196_vm4, %v2127_v54 }
0x1a0d   :  { %3089 = vmatpush3.msra.mxu0 %v3886_v43  ;;  %3092 = vmatprep.mubr.msk.f32.mxu0 %vm3297_vm5, %v3294_v3  ;;  %v2332_v58 = vpop.permute.xlu1 %2331 }
0x1a0e   :  { %3090 = vmatprep.subr.mxu0 %v3294_v3 }
0x1a0f   :  { %3091 = vmatpush3.msra.mxu0 %v3895_v44  ;;  %v2543_v47 = vpop.permute.xlu0 %2542 }
0x1a10   :  { %v2545_v59 = vmul.f32 %v2543_v47, %v2540_v13  ;;  %3093 = vmatmul.mubr.msk.f32.vlgmr.msra.gmra.mxu0 %vm196_vm4, %v2332_v58  ;;  %2579 = vmatprep.subr.mxu0 %v3817_v30 }
0x1a11   :  { %2580 = vmatpush1.msra.mxu0 %v3823_v17  ;;  %2615 = vmatprep.mubr.f32.mxu0 %v3294_v3 }
0x1a12   :  { %2547 = vrot.lane.b32.xlu1 %v2545_v59, %s3296_s24  ;;  %2581 = vmatprep.subr.mxu0 %v3831_v18 }
0x1a13   :  { %2582 = vmatpush1.msra.mxu0 %v3837_v46 }
0x1a14   :  { %3109 = vmatprep.subr.mxu0 %v3294_v3 }
0x1a84   :  { %v3906_v0 = vpop.permute.xlu1 %2547 }
0x1a85   :  { %2937 = vmatmul.mubr.msk.f32.vlgmr.msra.gmra.mxu0 %vm196_vm4, %v3906_v0 }
0x1a86   :  { %3125 = vmatprep.mubr.msk.f32.mxu0 %vm3297_vm5, %v3294_v3 }
0x1acc   :  { %v2196_v30 = vpop.f32.mrf.mxu0 }
0x1acd   :  { %2414 = vrot.lane.b32.xlu1 %v2196_v30, %s3301_s7 }
0x1ace   :  { %v3087_v17 = vpop.f32.mrf.mxu0 }
0x1ad0   :  { %v2401_v51 = vpop.f32.mrf.mxu0 }
0x1ad1   :  { %2408 = vrot.lane.b32.xlu0 %v2401_v51, %s3299_s30 }
0x1ad2   :  { %v3094_v18 = vpop.f32.mrf.mxu0 }
0x1b3f   :  { %v2415_v60 = vpop.permute.xlu1 %2414 }
0x1b43   :  { %v2409_v1 = vpop.permute.xlu0 %2408 }
0x1b44   :  { %v2411_v46 = vadd.f32 %v2409_v1, %v3858_v33 }
0x1b45   :  { %v2617_v55 = vpop.f32.mrf.mxu0 }
0x1b46   :  { %v2417_v61 = vadd.f32 %v2415_v60, %v2411_v46  ;;  %v2622_v62 = vadd.f32 %v2617_v55, %v3855_v39  ;;  %v2211_v39 = vld [vmem:[#allocation2 + $0x68] sm:$0xff] }
0x1b47   :  { %v2405_v34 = vadd.f32 %v2211_v39, %v3569_v56 }
0x1b48   :  { %v2934_v63 = vmul.f32 -1.442695, %v2417_v61  ;;  %v2623_v2 = vadd.f32 %v2622_v62, %v2409_v1 }
0x1b49   :  { %v2406_v50 = vadd.f32 %v2405_v34, %v2306_v32 }
0x1b4a   :  { %3269 = vpow2.f32 %v2934_v63  ;;  %v2938_v49 = vmul.f32 -1.442695, %v2623_v2 }
0x1b4b   :  { %v2412_v35 = vadd.f32 %v2409_v1, %v2406_v50 }
0x1b4c   :  { %3271 = vpow2.f32 %v2938_v49 }
0x1b4d   :  { %v2418_v4 = vadd.f32 %v2415_v60, %v2412_v35 }
0x1b57   :  { %v3270_v10 = vpop.eup %3269 }
0x1b58   :  { %v2422_v19 = vadd.f32 1.0, %v3270_v10 }
0x1b59   :  { %v3272_v15 = vpop.eup %3271 }
0x1b5a   :  { %3273 = vrcp.f32 %v2422_v19  ;;  %v2627_v20 = vadd.f32 1.0, %v3272_v15 }
0x1b5c   :  { %3275 = vrcp.f32 %v2627_v20 }
0x1b67   :  { %v3274_v23 = vpop.eup %3273 }
0x1b68   :  { %v2425_v25 = vmul.f32 %v3274_v23, %v3559_v31 }
0x1b69   :  { %v3276_v33 = vpop.eup %3275 }
0x1b6a   :  { %2427 = vrot.lane.b32.xlu0 %v2425_v25, %s3295_s15  ;;  %v2630_v52 = vmul.f32 %v3276_v33, %v3519_v12  ;;  %v2432_v12 = vsub.f32 1.0, %v3274_v23  ;;  %v2637_v47 = vsub.f32 1.0, %v3276_v33 }
0x1b6c   :  { %2632 = vrot.lane.b32.xlu1 %v2630_v52, %s3295_s15 }
0x1bdc   :  { %v2428_v41 = vpop.permute.xlu0 %2427 }
0x1bdd   :  { %v2430_v7 = vadd.f32 %v2428_v41, %v2418_v4 }
0x1bde   :  { %v2633_v38 = vpop.permute.xlu1 %2632 }
0x1bdf   :  { %3277 = vtanh.f32 %v2430_v7  ;;  %v2635_v40 = vadd.f32 %v2633_v38, %v2623_v2 }
0x1be1   :  { %3279 = vtanh.f32 %v2635_v40 }
0x1bec   :  { %v3278_v48 = vpop.eup %3277 }
0x1bed   :  { %2434 = vrot.lane.b32.xlu0 %v3278_v48, %s3296_s24 }
0x1bee   :  { %v3280_v54 = vpop.eup %3279 }
0x1bef   :  { %2639 = vrot.lane.b32.xlu1 %v3280_v54, %s3296_s24 }
0x1c5f   :  { %v2435_v13 = vpop.permute.xlu0 %2434 }
0x1c60   :  { %v2437_v58 = vmul.f32 %v2435_v13, %v2432_v12 }
0x1c61   :  { %v2640_v59 = vpop.permute.xlu1 %2639 }
0x1c62   :  { %v2642_v30 = vmul.f32 %v2640_v59, %v2637_v47  ;;  %2439 = vrot.lane.b32.xlu0 %v2437_v58, %s3300_s14 }
0x1c64   :  { %2644 = vrot.lane.b32.xlu1 %v2642_v30, %s3298_s29 }
0x1cd4   :  { %v2440_v17 = vpop.permute.xlu0 %2439 }
0x1cd5   :  { %3100 = vmatmul.mubr.msk.f32.vlgmr.msra.gmra.mxu1 %vm196_vm4, %v2440_v17 }
0x1cd6   :  { %3103 = vmatpush3.msra.mxu1 %v3886_v43  ;;  %3106 = vmatprep.mubr.msk.f32.mxu1 %vm3297_vm5, %v3294_v3  ;;  %v2645_v51 = vpop.permute.xlu1 %2644 }
0x1cd7   :  { %3104 = vmatprep.subr.mxu1 %v3294_v3 }
0x1cd8   :  { %3105 = vmatpush3.msra.mxu1 %v3895_v44 }
0x1cd9   :  { %3107 = vmatmul.mubr.msk.f32.vlgmr.msra.gmra.mxu1 %vm196_vm4, %v2645_v51 }
0x1d95   :  { %v2509_v18 = vpop.f32.mrf.mxu1 }
0x1d96   :  { %2727 = vrot.lane.b32.xlu1 %v2509_v18, %s3301_s7 }
0x1d97   :  { %v3101_v1 = vpop.f32.mrf.mxu1 }
0x1d99   :  { %v2714_v46 = vpop.f32.mrf.mxu1 }
0x1d9a   :  { %2721 = vrot.lane.b32.xlu0 %v2714_v46, %s3299_s30 }
0x1d9b   :  { %v3108_v60 = vpop.f32.mrf.mxu1 }
0x1e08   :  { %v2728_v61 = vpop.permute.xlu1 %2727 }
0x1e0c   :  { %v2722_v55 = vpop.permute.xlu0 %2721 }
0x1e0d   :  { %v2724_v43 = vadd.f32 %v2722_v55, %v2622_v62  ;;  %v2524_v62 = vld [vmem:[#allocation2 + $0x78] sm:$0xff] }
0x1e0e   :  { %v2718_v15 = vadd.f32 %v2524_v62, %v3569_v56  ;;  %v2771_v56 = vld [vmem:[%s4025_s10] sm:$0x3f] }
0x1e0f   :  { %v2730_v63 = vadd.f32 %v2728_v61, %v2724_v43 }
0x1e11   :  { %v2940_v2 = vmul.f32 -1.442695, %v2730_v63 }
0x1e13   :  { %3281 = vpow2.f32 %v2940_v2 }
0x1e20   :  { %v3282_v49 = vpop.eup %3281 }
0x1e21   :  { %v2735_v10 = vadd.f32 1.0, %v3282_v49 }
0x1e23   :  { %3283 = vrcp.f32 %v2735_v10 }
0x1e30   :  { %v3284_v44 = vpop.eup %3283 }
0x1e31   :  { %v2738_v19 = vmul.f32 %v3284_v44, %v3559_v31  ;;  %v2619_v31 = vpop.f32.mrf.mxu0 }
0x1e32   :  { %v2719_v20 = vadd.f32 %v2718_v15, %v2619_v31 }
0x1e33   :  { %2740 = vrot.lane.b32.xlu0 %v2738_v19, %s3295_s15 }
0x1e34   :  { %v2725_v23 = vadd.f32 %v2722_v55, %v2719_v20 }
0x1e36   :  { %v2731_v25 = vadd.f32 %v2728_v61, %v2725_v23 }
0x1e37   :  { %2752 = vrot.lane.b32.xlu0 %v2642_v30, %s3302_s6 }
0x1e3b   :  { %2514 = vrot.lane.b32.xlu0 %v3875_v42, %s3302_s6 }
0x1e3f   :  { %2201 = vrot.lane.b32.xlu0 %v3800_v8, %s3302_s6 }
0x1e43   :  { %1888 = vrot.lane.b32.xlu0 %v3750_v57, %s3302_s6 }
0x1e47   :  { %1575 = vrot.lane.b32.xlu0 %v3698_v16, %s3302_s6  ;;  %v2745_v16 = vsub.f32 1.0, %v3284_v44 }
0x1e4b   :  { %1262 = vrot.lane.b32.xlu0 %v3661_v24, %s3302_s6 }
0x1e4f   :  { %949 = vrot.lane.b32.xlu0 %v3612_v36, %s3302_s6 }
0x1e53   :  { %634 = vrot.lane.b32.xlu0 %v3548_v27, %s3302_s6  ;;  %v3303_v27 = vmov 0  }
0x1e54   :  { %3142 = vset.pattern.permute.xlu0 %v3303_v27 }
0x1e57   :  { %2774 = vperm.xlu0 %3142, %v2771_v56  }
0x1ea5   :  { %v2741_v42 = vpop.permute.xlu0 %2740 }
0x1ea6   :  { %v2743_v33 = vadd.f32 %v2741_v42, %v2731_v25 }
0x1ea8   :  { %3285 = vtanh.f32 %v2743_v33 }
0x1ea9   :  { %v2753_v36 = vpop.permute.xlu0 %2752 }
0x1eb5   :  { %v3286_v8 = vpop.eup %3285 }
0x1eb6   :  { %2747 = vrot.lane.b32.xlu1 %v3286_v8, %s3296_s24 }
0x1f28   :  { %v2748_v57 = vpop.permute.xlu1 %2747 }
0x1f29   :  { %v2750_v24 = vmul.f32 %v2748_v57, %v2745_v16 }
0x1f2b   :  { %2756 = vrot.lane.b32.xlu1 %v2750_v24, %s3299_s30 }
0x1f2f   :  { %2517 = vrot.lane.b32.xlu1 %v2437_v58, %s3299_s30 }
0x1f33   :  { %2204 = vrot.lane.b32.xlu1 %v3873_v45, %s3299_s30 }
0x1f37   :  { %1891 = vrot.lane.b32.xlu1 %v3798_v6, %s3299_s30  ;;  %v2515_v6 = vpop.permute.xlu0 %2514 }
0x1f3b   :  { %1578 = vrot.lane.b32.xlu1 %v3748_v53, %s3299_s30  ;;  %v2202_v45 = vpop.permute.xlu0 %2201 }
0x1f3c   :  { %v2207_v50 = vsel %vm196_vm4, %v3771_v22, %v2202_v45 }
0x1f3f   :  { %1265 = vrot.lane.b32.xlu1 %v3700_v28, %s3299_s30  ;;  %v2759_v28 = vsel %vm196_vm4, %v3906_v0, %v2753_v36 }
0x1f43   :  { %952 = vrot.lane.b32.xlu1 %v3633_v26, %s3299_s30  ;;  %v1889_v26 = vpop.permute.xlu0 %1888 }
0x1f47   :  { %637 = vrot.lane.b32.xlu1 %v3587_v9, %s3299_s30  ;;  %v2520_v9 = vsel %vm196_vm4, %v3841_v21, %v2515_v6  ;;  %v1576_v34 = vpop.permute.xlu0 %1575  ;;  %v1894_v21 = vsel %vm196_vm4, %v3721_v37, %v1889_v26 }
0x1f48   :  { %v1581_v22 = vsel %vm196_vm4, %v3672_v14, %v1576_v34 }
0x1f4b   :  { %v1263_v7 = vpop.permute.xlu0 %1262 }
0x1f4c   :  { %v1268_v13 = vsel %vm196_vm4, %v3641_v29, %v1263_v7 }
0x1f4f   :  { %v950_v37 = vpop.permute.xlu0 %949 }
0x1f50   :  { %v955_v14 = vsel %vm196_vm4, %v3595_v11, %v950_v37 }
0x1f53   :  { %v635_v17 = vpop.permute.xlu0 %634 }
0x1f54   :  { %v640_v29 = vsel %vm196_vm4, %v3510_v5, %v635_v17  ;;  %v2762_v5 = vld [vmem:[%s4026_s9] sm:$0x3f] }
0x1f57   :  { %v2775_v43 = vpop.permute.xlu0 %2774 }
0x1f9d   :  { %v2757_v53 = vpop.permute.xlu1 %2756 }
0x1f9e   :  { %v2760_v52 = vsel %vm641_vm6, %v2759_v28, %v2757_v53 }
0x1f9f   :  { %2761 = vst.msk [vmem:[#allocation3 + $0x38] sm:$0xff] %vm643_vm7, %v2760_v52 }
0x1fa1   :  { %v2518_v39 = vpop.permute.xlu1 %2517 }
0x1fa2   :  { %v2521_v32 = vsel %vm641_vm6, %v2520_v9, %v2518_v39 }
0x1fa3   :  { %2522 = vst.msk [vmem:[#allocation3 + $0x30] sm:$0xff] %vm643_vm7, %v2521_v32 }
0x1fa5   :  { %v2205_v35 = vpop.permute.xlu1 %2204 }
0x1fa6   :  { %v2208_v0 = vsel %vm641_vm6, %v2207_v50, %v2205_v35  ;;  %v2770_v4 = vld [vmem:[#allocation3 + $0x38] sm:$0xff] }
0x1fa7   :  { %2209 = vst.msk [vmem:[#allocation3 + $0x28] sm:$0xff] %vm643_vm7, %v2208_v0  ;;  %3110 = vmatpush3.xpose.msk.msra.mxu0 %vm643_vm7, %v2770_v4 }
0x1fa8   :  { %3111 = vmatprep.subr.mxu0 %v3294_v3 }
0x1fa9   :  { %v1892_v41 = vpop.permute.xlu1 %1891 }
0x1faa   :  { %v1895_v38 = vsel %vm641_vm6, %v1894_v21, %v1892_v41  ;;  %v2769_v40 = vld [vmem:[#allocation3 + $0x30] sm:$0xff] }
0x1fab   :  { %1896 = vst.msk [vmem:[#allocation3 + $0x20] sm:$0xff] %vm643_vm7, %v1895_v38  ;;  %3112 = vmatpush3.xpose.msk.msra.mxu0 %vm643_vm7, %v2769_v40 }
0x1fac   :  { %3113 = vmatprep.subr.mxu0 %v3294_v3 }
0x1fad   :  { %v1579_v48 = vpop.permute.xlu1 %1578 }
0x1fae   :  { %v1582_v54 = vsel %vm641_vm6, %v1581_v22, %v1579_v48  ;;  %v2768_v12 = vld [vmem:[#allocation3 + $0x28] sm:$0xff] }
0x1faf   :  { %1583 = vst.msk [vmem:[#allocation3 + $0x18] sm:$0xff] %vm643_vm7, %v1582_v54  ;;  %3114 = vmatpush3.xpose.msk.msra.mxu0 %vm643_vm7, %v2768_v12 }
0x1fb0   :  { %3115 = vmatprep.subr.mxu0 %v3294_v3 }
0x1fb1   :  { %v1266_v58 = vpop.permute.xlu1 %1265 }
0x1fb2   :  { %v1269_v47 = vsel %vm641_vm6, %v1268_v13, %v1266_v58  ;;  %v2767_v59 = vld [vmem:[#allocation3 + $0x20] sm:$0xff] }
0x1fb3   :  { %1270 = vst.msk [vmem:[#allocation3 + $0x10] sm:$0xff] %vm643_vm7, %v1269_v47  ;;  %3116 = vmatpush3.xpose.msk.msra.mxu0 %vm643_vm7, %v2767_v59 }
0x1fb4   :  { %3117 = vmatprep.subr.mxu0 %v3294_v3 }
0x1fb5   :  { %v953_v30 = vpop.permute.xlu1 %952 }
0x1fb6   :  { %v956_v51 = vsel %vm641_vm6, %v955_v14, %v953_v30  ;;  %v2766_v18 = vld [vmem:[#allocation3 + $0x18] sm:$0xff] }
0x1fb7   :  { %957 = vst.msk [vmem:[#allocation3 + $0x8] sm:$0xff] %vm643_vm7, %v956_v51  ;;  %3118 = vmatpush3.xpose.msk.msra.mxu0 %vm643_vm7, %v2766_v18 }
0x1fb8   :  { %3119 = vmatprep.subr.mxu0 %v3294_v3 }
0x1fb9   :  { %v638_v1 = vpop.permute.xlu1 %637 }
0x1fba   :  { %v642_v46 = vsel %vm641_vm6, %v640_v29, %v638_v1  ;;  %v2765_v60 = vld [vmem:[#allocation3 + $0x10] sm:$0xff] }
0x1fbb   :  { %644 = vst.msk [vmem:[#allocation3] sm:$0xff] %vm643_vm7, %v642_v46  ;;  %3120 = vmatpush3.xpose.msk.msra.mxu0 %vm643_vm7, %v2765_v60 }
0x1fbc   :  { %3121 = vmatprep.subr.mxu0 %v3294_v3 }
0x1fbe   :  { %v2764_v11 = vld [vmem:[#allocation3 + $0x8] sm:$0xff] }
0x1fbf   :  { %3122 = vmatpush3.xpose.msk.msra.mxu0 %vm643_vm7, %v2764_v11 }
0x1fc0   :  { %3123 = vmatprep.subr.mxu0 %v3294_v3 }
0x1fc2   :  { %v2763_v55 = vld [vmem:[#allocation3] sm:$0xff] }
0x1fc3   :  { %3124 = vmatpush3.xpose.msk.msra.mxu0 %vm643_vm7, %v2763_v55 }
0x1fc6   :  { %3126 = vmatmul.mubr.msk.f32.vlgmr.msra.gmra.mxu0 %vm643_vm7, %v2762_v5 }
0x2086   :  { %v2870_v61 = vpop.f32.mrf.mxu0 }
0x2087   :  { %v2871_v63 = vadd.f32 %v2870_v61, %v2775_v43 }
0x2088   :  { %v3127_v2 = vpop.f32.mrf.mxu0 }
0x2089   :  { %2875 = vst.msk [vmem:[%s4027_s11] sm:$0x3f] %vm2874_vm8, %v2871_v63 }

</bundles_post_ra>
